<compile_context>
chip_gen: v7x
topology: tpu7x:2x2x1
jax: 0.10.0
libtpu: 0.0.40
codegen_flags: <defaults>
</compile_context>

<pallas_src>
import functools

import jax
import jax.numpy as jnp
from jax.experimental import pallas as pl
from jax.experimental.pallas import tpu as pltpu


def _ffn_kernel(x_ref, w1_ref, b1_ref, w2_ref, b2_ref, o_ref, acc_ref):
    # x_ref:  (tm, dim)      w1_ref: (dim, th)   b1_ref: (1, th)
    # w2_ref: (th, dim)      b2_ref: (1, dim)    o_ref:  (tm, dim)
    # acc_ref: (tm, dim) f32 accumulator, resident across the hidden grid axis.
    h_idx = pl.program_id(1)

    @pl.when(h_idx == 0)
    def _():
        acc_ref[...] = jnp.zeros_like(acc_ref)

    # ff1 partial: x @ W1[:, h_slice] + b1[h_slice], f32 accumulation on the MXU.
    h = jnp.dot(x_ref[...], w1_ref[...], preferred_element_type=jnp.float32)
    h = h + b1_ref[...].astype(jnp.float32)

    # SiLU in f32 (exact per hidden slice since it is elementwise over hidden).
    h = h * jax.nn.sigmoid(h)

    # Dropout with p=0.0 is the identity in both train and eval -> no-op.
    # TODO(synk): dropout with p>0 would need pltpu.prng_seed/prng_random_bits masking.

    # ff2 partial: silu(...) @ W2[h_slice, :], accumulated into the f32 scratch.
    # h is cast to the weight dtype (no-op for f32, bf16 MXU path for bf16 weights).
    acc_ref[...] += jnp.dot(h.astype(w2_ref.dtype), w2_ref[...],
                            preferred_element_type=jnp.float32)

    @pl.when(h_idx == pl.num_programs(1) - 1)
    def _():
        o_ref[...] = (acc_ref[...] + b2_ref[...].astype(jnp.float32)).astype(o_ref.dtype)


@functools.partial(jax.jit, static_argnames=("tm", "th"))
def feed_forward(x, w1, b1, w2, b2, *, tm=256, th=256):
    """x: (B, S, dim) -> (B, S, dim). Weights stored as (in, out): y = x @ W + b."""
    B, S, dim = x.shape
    hidden = w1.shape[1]
    N = B * S

    x2d = x.reshape(N, dim)

    # Pad the token axis up to a multiple of tm (rows are independent).
    n_pad = (-N) % tm
    if n_pad:
        x2d = jnp.pad(x2d, ((0, n_pad), (0, 0)))
    Np = N + n_pad

    # Hidden tile must evenly divide hidden; fall back to the full hidden dim otherwise.
    if hidden % th != 0:
        th = hidden

    b1_2d = b1.reshape(1, hidden)
    b2_2d = b2.reshape(1, dim)

    itemsize = x.dtype.itemsize
    cost = pl.CostEstimate(
        flops=2 * Np * dim * hidden * 2,          # two matmuls
        transcendentals=Np * hidden,              # sigmoid in SiLU
        bytes_accessed=(x2d.size + w1.size + w2.size + b1.size + b2.size
                        + Np * dim) * itemsize,
    )

    out2d = pl.pallas_call(
        _ffn_kernel,
        out_shape=jax.ShapeDtypeStruct((Np, dim), x.dtype),
        grid_spec=pltpu.PrefetchScalarGridSpec(
            num_scalar_prefetch=0,
            grid=(Np // tm, hidden // th),        # hidden (reduction-like) axis last
            in_specs=[
                pl.BlockSpec((tm, dim), lambda i, h: (i, 0)),   # x tile
                pl.BlockSpec((dim, th), lambda i, h: (0, h)),   # W1 hidden slab
                pl.BlockSpec((1, th), lambda i, h: (0, h)),     # b1 hidden slab
                pl.BlockSpec((th, dim), lambda i, h: (h, 0)),   # W2 hidden slab
                pl.BlockSpec((1, dim), lambda i, h: (0, 0)),    # b2 (full)
            ],
            out_specs=pl.BlockSpec((tm, dim), lambda i, h: (i, 0)),
            scratch_shapes=[pltpu.VMEM((tm, dim), jnp.float32)],
        ),
        compiler_params=pltpu.CompilerParams(
            dimension_semantics=("parallel", "arbitrary"),
        ),
        cost_estimate=cost,
    )(x2d, w1, b1_2d, w2, b2_2d)

    if n_pad:
        out2d = out2d[:N]
    return out2d.reshape(B, S, dim)


def init_params(key, dim, hidden_dim, dtype=jnp.float32):
    """Deterministic init mirroring nn.Linear's uniform(-1/sqrt(fan_in), 1/sqrt(fan_in))."""
    k1, k2, k3, k4 = jax.random.split(key, 4)
    bound1 = 1.0 / (dim ** 0.5)
    bound2 = 1.0 / (hidden_dim ** 0.5)
    # Store weights as (in, out) so the kernel does x @ W.
    w1 = jax.random.uniform(k1, (dim, hidden_dim), dtype, -bound1, bound1)
    b1 = jax.random.uniform(k2, (hidden_dim,), dtype, -bound1, bound1)
    w2 = jax.random.uniform(k3, (hidden_dim, dim), dtype, -bound2, bound2)
    b2 = jax.random.uniform(k4, (dim,), dtype, -bound2, bound2)
    return w1, b1, w2, b2


def feed_forward_ref(x, w1, b1, w2, b2):
    h = jnp.einsum("bsd,dh->bsh", x.astype(jnp.float32), w1.astype(jnp.float32)) + b1
    h = h * jax.nn.sigmoid(h)
    return (jnp.einsum("bsh,hd->bsd", h, w2.astype(jnp.float32)) + b2).astype(x.dtype)


if __name__ == "__main__":
    key = jax.random.PRNGKey(0)
    kx, kp = jax.random.split(key)

    # Small but lane-dense shapes: dim multiple of 128, hidden multiple of the hidden
    # tile; token count deliberately NOT a multiple of tm to exercise the padding path.
    B, S, dim, hidden = 2, 100, 128, 512
    x = jax.random.normal(kx, (B, S, dim), jnp.float32)
    w1, b1, w2, b2 = init_params(kp, dim, hidden)

    out = feed_forward(x, w1, b1, w2, b2, tm=256, th=256)
    out = jax.block_until_ready(out)

    ref = feed_forward_ref(x, w1, b1, w2, b2)
    assert out.shape == (B, S, dim)
    assert jnp.allclose(out, ref, atol=1e-3, rtol=1e-3), "mismatch vs reference"

    print("KERNEL_OK")
</pallas_src>

<mosaic_0001>
module attributes {stable_mosaic.version = 11 : i64} {
  func.func @_ffn_kernel(%arg0: i32, %arg1: i32, %arg2: memref<256x128xf32, #tpu.memory_space<vmem>>, %arg3: memref<128x256xf32, #tpu.memory_space<vmem>>, %arg4: memref<1x256xf32, #tpu.memory_space<vmem>>, %arg5: memref<256x128xf32, #tpu.memory_space<vmem>>, %arg6: memref<1x128xf32, #tpu.memory_space<vmem>>, %arg7: memref<256x128xf32, #tpu.memory_space<vmem>>, %arg8: memref<256x128xf32, #tpu.memory_space<vmem>>) attributes {dimension_semantics = [#tpu.dimension_semantics<parallel>, #tpu.dimension_semantics<arbitrary>], iteration_bounds = array<i64: 1, 2>, scalar_prefetch = 0 : i64, scratch_operands = 1 : i64, tpu.core_type = #tpu.core_type<tc>, window_params = [{transform_indices = @transform_0, window_bounds = array<i64: 256, 128>}, {transform_indices = @transform_1, window_bounds = array<i64: 128, 256>}, {transform_indices = @transform_2, window_bounds = array<i64: 1, 256>}, {transform_indices = @transform_3, window_bounds = array<i64: 256, 128>}, {pipeline_mode = #tpu.pipeline_mode<synchronous>, transform_indices = @transform_4, window_bounds = array<i64: 1, 128>}, {transform_indices = @transform_5, window_bounds = array<i64: 256, 128>}]} {
    %c0_i32 = arith.constant 0 : i32
    %0 = arith.cmpi eq, %arg1, %c0_i32 : i32
    %1 = arith.extui %0 : i1 to i32
    %c0_i32_0 = arith.constant 0 : i32
    %2 = arith.cmpi ne, %1, %c0_i32_0 : i32
    scf.if %2 {
      %cst_15 = arith.constant 0.000000e+00 : f32
      %23 = vector.broadcast %cst_15 : f32 to vector<256x128xf32>
      %c0_16 = arith.constant 0 : index
      %c0_17 = arith.constant 0 : index
      %24 = vector.load %arg8[%c0_16, %c0_17] : memref<256x128xf32, #tpu.memory_space<vmem>>, vector<256x128xf32>
      tpu.vector_store %arg8[%c0_16, %c0_17], %23 {strides = array<i32>} : memref<256x128xf32, #tpu.memory_space<vmem>>, vector<256x128xf32>,
    } else {
    }
    %c0 = arith.constant 0 : index
    %c0_1 = arith.constant 0 : index
    %3 = vector.load %arg2[%c0, %c0_1] : memref<256x128xf32, #tpu.memory_space<vmem>>, vector<256x128xf32>
    %c0_2 = arith.constant 0 : index
    %c0_3 = arith.constant 0 : index
    %4 = vector.load %arg3[%c0_2, %c0_3] : memref<128x256xf32, #tpu.memory_space<vmem>>, vector<128x256xf32>
    %cst = arith.constant dense<0.000000e+00> : vector<256x256xf32>
    %5 = tpu.matmul %3, %4, %cst {dimension_numbers = #tpu.dot_dimension_numbers<[1], [0], [0], [1], [0, 0, 1, 1], [], []>} : vector<256x128xf32>, vector<128x256xf32>, vector<256x256xf32> -> vector<256x256xf32>
    %c0_4 = arith.constant 0 : index
    %c0_5 = arith.constant 0 : index
    %6 = vector.load %arg4[%c0_4, %c0_5] : memref<1x256xf32, #tpu.memory_space<vmem>>, vector<1x256xf32>
    %7 = vector.broadcast %6 : vector<1x256xf32> to vector<256x256xf32>
    %8 = arith.addf %5, %7 : vector<256x256xf32>
    %9 = arith.negf %8 : vector<256x256xf32>
    %10 = math.exp %9 : vector<256x256xf32>
    %cst_6 = arith.constant 1.000000e+00 : f32
    %11 = vector.broadcast %cst_6 : f32 to vector<256x256xf32>
    %12 = arith.addf %11, %10 : vector<256x256xf32>
    %13 = arith.divf %11, %12 : vector<256x256xf32>
    %14 = arith.mulf %8, %13 : vector<256x256xf32>
    %c0_7 = arith.constant 0 : index
    %c0_8 = arith.constant 0 : index
    %15 = vector.load %arg8[%c0_7, %c0_8] : memref<256x128xf32, #tpu.memory_space<vmem>>, vector<256x128xf32>
    %c0_9 = arith.constant 0 : index
    %c0_10 = arith.constant 0 : index
    %16 = vector.load %arg5[%c0_9, %c0_10] : memref<256x128xf32, #tpu.memory_space<vmem>>, vector<256x128xf32>
    %cst_11 = arith.constant dense<0.000000e+00> : vector<256x128xf32>
    %17 = tpu.matmul %14, %16, %cst_11 {dimension_numbers = #tpu.dot_dimension_numbers<[1], [0], [0], [1], [0, 0, 1, 1], [], []>} : vector<256x256xf32>, vector<256x128xf32>, vector<256x128xf32> -> vector<256x128xf32>
    %18 = arith.addf %15, %17 : vector<256x128xf32>
    %c0_12 = arith.constant 0 : index
    %c0_13 = arith.constant 0 : index
    %19 = vector.load %arg8[%c0_12, %c0_13] : memref<256x128xf32, #tpu.memory_space<vmem>>, vector<256x128xf32>
    tpu.vector_store %arg8[%c0_12, %c0_13], %18 {strides = array<i32>} : memref<256x128xf32, #tpu.memory_space<vmem>>, vector<256x128xf32>,
    %c1_i32 = arith.constant 1 : i32
    %20 = arith.cmpi eq, %arg1, %c1_i32 : i32
    %21 = arith.extui %20 : i1 to i32
    %c0_i32_14 = arith.constant 0 : i32
    %22 = arith.cmpi ne, %21, %c0_i32_14 : i32
    scf.if %22 {
      %c0_15 = arith.constant 0 : index
      %c0_16 = arith.constant 0 : index
      %23 = vector.load %arg8[%c0_15, %c0_16] : memref<256x128xf32, #tpu.memory_space<vmem>>, vector<256x128xf32>
      %c0_17 = arith.constant 0 : index
      %c0_18 = arith.constant 0 : index
      %24 = vector.load %arg6[%c0_17, %c0_18] : memref<1x128xf32, #tpu.memory_space<vmem>>, vector<1x128xf32>
      %25 = vector.broadcast %24 : vector<1x128xf32> to vector<256x128xf32>
      %26 = arith.addf %23, %25 : vector<256x128xf32>
      %c0_19 = arith.constant 0 : index
      %c0_20 = arith.constant 0 : index
      %27 = vector.load %arg7[%c0_19, %c0_20] : memref<256x128xf32, #tpu.memory_space<vmem>>, vector<256x128xf32>
      tpu.vector_store %arg7[%c0_19, %c0_20], %26 {strides = array<i32>} : memref<256x128xf32, #tpu.memory_space<vmem>>, vector<256x128xf32>,
    } else {
    }
    return
  }
  func.func @transform_0(%arg0: i32, %arg1: i32) -> (i32, i32) {
    %c0_i32 = arith.constant 0 : i32
    %c0_i32_0 = arith.constant 0 : i32
    return %arg0, %c0_i32 : i32, i32
  }
  func.func @transform_1(%arg0: i32, %arg1: i32) -> (i32, i32) {
    %c0_i32 = arith.constant 0 : i32
    %c0_i32_0 = arith.constant 0 : i32
    return %c0_i32, %arg1 : i32, i32
  }
  func.func @transform_2(%arg0: i32, %arg1: i32) -> (i32, i32) {
    %c0_i32 = arith.constant 0 : i32
    %c0_i32_0 = arith.constant 0 : i32
    return %c0_i32, %arg1 : i32, i32
  }
  func.func @transform_3(%arg0: i32, %arg1: i32) -> (i32, i32) {
    %c0_i32 = arith.constant 0 : i32
    %c0_i32_0 = arith.constant 0 : i32
    return %arg1, %c0_i32 : i32, i32
  }
  func.func @transform_4(%arg0: i32, %arg1: i32) -> (i32, i32) {
    %c0_i32 = arith.constant 0 : i32
    %c0_i32_0 = arith.constant 0 : i32
    %c0_i32_1 = arith.constant 0 : i32
    return %c0_i32, %c0_i32_0 : i32, i32
  }
  func.func @transform_5(%arg0: i32, %arg1: i32) -> (i32, i32) {
    %c0_i32 = arith.constant 0 : i32
    %c0_i32_0 = arith.constant 0 : i32
    return %arg0, %c0_i32 : i32, i32
  }
}

</mosaic_0001>

<bundles_post_ra>
// kernel: feed_forward.1
= control target key start
LH: loop header
LB: loop body
LE: loop exit
PB: predicated region body
PF: predicated region fallthrough
CT: control target
= control target key end

     0   :  { %s2333_s18 = smov 0   ;;  %s2335_s19 = smov 0   ;;  %s3165_s0 = inlined_call_operand.vmem [shape: f32[256,128], index: 0, kind: input, shape index: {}]   ;;  %s3166_s1 = inlined_call_operand.vmem [shape: f32[128,512], index: 1, kind: input, shape index: {}]   ;;  %s3167_s2 = inlined_call_operand.vmem [shape: f32[1,512], index: 2, kind: input, shape index: {}]   ;;  %s3168_s3 = inlined_call_operand.vmem [shape: f32[512,128], index: 3, kind: input, shape index: {}]   ;;  %s3169_s4 = inlined_call_operand.vmem [shape: f32[1,128], index: 4, kind: input, shape index: {}]   ;;  %s3170_s5 = inlined_call_operand.vmem [shape: f32[256,128], index: 5, kind: output, shape index: {}]  }
   0x1   :  { %s2337_s20 = smov 0   ;;  %s2339_s21 = smov 0  }
   0x2   :  { %s2341_s22 = smov 0  }
   0x3 LB: > { %s24_s23 = sadd.s32 1, %s2294_s21  ;;  %p67_p1 = scmp.ne.s32.totalorder %s2286_s19, %s2282_s18  ;;  %s2298_s22 = sphi %s2341_s22, %s15_s22   ;;  %s2294_s21 = sphi %s2339_s21, %s3174_s21   ;;  %s2290_s20 = sphi %s2337_s20, %s3173_s20   ;;  %s2286_s19 = sphi %s2335_s19, %s3172_s19   ;;  %s2282_s18 = sphi %s2333_s18, %s3171_s18  }
   0x4   : > { %p25_p0 = scmp.ge.s32.totalorder %s24_s23, 2  ;;  %p68_p2 = scmp.eq.s32.totalorder %s2298_s22, 0 }
   0x5   : > { %s60_s25 = sadd.s32 1, %s2286_s19  ;;  %p1768_p5 = scmp.ge.s32.totalorder %s2298_s22, 2 }
   0x6   : > { %s3176_s23 = smov (%p25_p0, %s24_s23), 0  ;;  %p69_p3 = por %p68_p2, %p67_p1 }
   0x7   : > { %s57_s24 = ssub.s32 %s2294_s21, %s3176_s23  ;;  %204 = sbr.rel (%p1768_p5) target bundleno = 34 (0x22), region = 24 }
   0x8   : > { %p58_p4 = scmp.eq.s32.totalorder %s57_s24, 0 }
   0xa   : > { %s2368_s26 = scalar_select %p58_p4, %s2286_s19, %s60_s25  }
   0xe   : > { %207 = sbr.rel (!%p69_p3) target bundleno = 34 (0x22), region = 28  ;;  %s209_s27 = sand.u32 (%p69_p3), 1, %s2286_s19  }
   0xf   : > { %s1848_s28 = sshll.u32 (%p69_p3), %s2294_s21, 4  ;;  %s1769_s29 = sshll.u32 (%p69_p3), %s209_s27, 8 }
  0x10   : > { %s2376_s7 = scalar_lea.vmem (%p69_p3), %s3166_s1, %s1848_s28  ;;  %s2381_s8 = scalar_lea.vmem (%p69_p3), [#allocation3], %s1769_s29 }
  0x11   : > { %v227_v0 = vld [vmem:[%s2376_s7] sm:$0xff] (%p69_p3)  ;;  %v229_v1 = vld [vmem:[%s2376_s7 + $0x8] sm:$0xff] (%p69_p3) }
  0x12   : > { %v231_v2 = vld [vmem:[%s2376_s7 + $0x20] sm:$0xff] (%p69_p3)  ;;  %228 = vst [vmem:[%s2381_s8] sm:$0xff] (%p69_p3), %v227_v0  ;;  %230 = vst [vmem:[%s2381_s8 + $0x8] sm:$0xff] (%p69_p3), %v229_v1  ;;  %v233_v3 = vld [vmem:[%s2376_s7 + $0x28] sm:$0xff] (%p69_p3) }
  0x13   : > { %232 = vst [vmem:[%s2381_s8 + $0x10] sm:$0xff] (%p69_p3), %v231_v2  ;;  %v235_v4 = vld [vmem:[%s2376_s7 + $0x40] sm:$0xff] (%p69_p3)  ;;  %v237_v5 = vld [vmem:[%s2376_s7 + $0x48] sm:$0xff] (%p69_p3)  ;;  %234 = vst [vmem:[%s2381_s8 + $0x18] sm:$0xff] (%p69_p3), %v233_v3 }
  0x14   : > { %236 = vst [vmem:[%s2381_s8 + $0x20] sm:$0xff] (%p69_p3), %v235_v4  ;;  %238 = vst [vmem:[%s2381_s8 + $0x28] sm:$0xff] (%p69_p3), %v237_v5  ;;  %v239_v6 = vld [vmem:[%s2376_s7 + $0x60] sm:$0xff] (%p69_p3)  ;;  %v241_v7 = vld [vmem:[%s2376_s7 + $0x68] sm:$0xff] (%p69_p3) }
  0x15   : > { %v243_v8 = vld [vmem:[%s2376_s7 + $0x80] sm:$0xff]  ;;  %240 = vst [vmem:[%s2381_s8 + $0x30] sm:$0xff] %v239_v6  ;;  %242 = vst [vmem:[%s2381_s8 + $0x38] sm:$0xff] %v241_v7  ;;  %v245_v9 = vld [vmem:[%s2376_s7 + $0x88] sm:$0xff] }
  0x16   : > { %244 = vst [vmem:[%s2381_s8 + $0x40] sm:$0xff] %v243_v8  ;;  %v247_v10 = vld [vmem:[%s2376_s7 + $0xa0] sm:$0xff]  ;;  %v249_v11 = vld [vmem:[%s2376_s7 + $0xa8] sm:$0xff]  ;;  %246 = vst [vmem:[%s2381_s8 + $0x48] sm:$0xff] %v245_v9 }
  0x17   : > { %248 = vst [vmem:[%s2381_s8 + $0x50] sm:$0xff] %v247_v10  ;;  %250 = vst [vmem:[%s2381_s8 + $0x58] sm:$0xff] %v249_v11  ;;  %v251_v12 = vld [vmem:[%s2376_s7 + $0xc0] sm:$0xff]  ;;  %v253_v13 = vld [vmem:[%s2376_s7 + $0xc8] sm:$0xff] }
  0x18   : > { %v255_v14 = vld [vmem:[%s2376_s7 + $0xe0] sm:$0xff]  ;;  %252 = vst [vmem:[%s2381_s8 + $0x60] sm:$0xff] %v251_v12  ;;  %254 = vst [vmem:[%s2381_s8 + $0x68] sm:$0xff] %v253_v13  ;;  %v257_v15 = vld [vmem:[%s2376_s7 + $0xe8] sm:$0xff] }
  0x19   : > { %256 = vst [vmem:[%s2381_s8 + $0x70] sm:$0xff] %v255_v14  ;;  %v259_v16 = vld [vmem:[%s2376_s7 + $0x100] sm:$0xff]  ;;  %v261_v17 = vld [vmem:[%s2376_s7 + $0x108] sm:$0xff]  ;;  %258 = vst [vmem:[%s2381_s8 + $0x78] sm:$0xff] %v257_v15 }
  0x1a   : > { %260 = vst [vmem:[%s2381_s8 + $0x80] sm:$0xff] %v259_v16  ;;  %262 = vst [vmem:[%s2381_s8 + $0x88] sm:$0xff] %v261_v17  ;;  %v263_v18 = vld [vmem:[%s2376_s7 + $0x120] sm:$0xff]  ;;  %v265_v19 = vld [vmem:[%s2376_s7 + $0x128] sm:$0xff] }
  0x1b   : > { %v267_v20 = vld [vmem:[%s2376_s7 + $0x140] sm:$0xff]  ;;  %264 = vst [vmem:[%s2381_s8 + $0x90] sm:$0xff] %v263_v18  ;;  %266 = vst [vmem:[%s2381_s8 + $0x98] sm:$0xff] %v265_v19  ;;  %v269_v21 = vld [vmem:[%s2376_s7 + $0x148] sm:$0xff] }
  0x1c   : > { %268 = vst [vmem:[%s2381_s8 + $0xa0] sm:$0xff] %v267_v20  ;;  %v271_v22 = vld [vmem:[%s2376_s7 + $0x160] sm:$0xff]  ;;  %v273_v23 = vld [vmem:[%s2376_s7 + $0x168] sm:$0xff]  ;;  %270 = vst [vmem:[%s2381_s8 + $0xa8] sm:$0xff] %v269_v21 }
  0x1d   : > { %272 = vst [vmem:[%s2381_s8 + $0xb0] sm:$0xff] %v271_v22  ;;  %274 = vst [vmem:[%s2381_s8 + $0xb8] sm:$0xff] %v273_v23  ;;  %v275_v24 = vld [vmem:[%s2376_s7 + $0x180] sm:$0xff]  ;;  %v277_v25 = vld [vmem:[%s2376_s7 + $0x188] sm:$0xff] }
  0x1e   : > { %v279_v26 = vld [vmem:[%s2376_s7 + $0x1a0] sm:$0xff]  ;;  %276 = vst [vmem:[%s2381_s8 + $0xc0] sm:$0xff] %v275_v24  ;;  %278 = vst [vmem:[%s2381_s8 + $0xc8] sm:$0xff] %v277_v25  ;;  %v281_v27 = vld [vmem:[%s2376_s7 + $0x1a8] sm:$0xff] }
  0x1f   : > { %280 = vst [vmem:[%s2381_s8 + $0xd0] sm:$0xff] %v279_v26  ;;  %v283_v28 = vld [vmem:[%s2376_s7 + $0x1c0] sm:$0xff]  ;;  %v285_v29 = vld [vmem:[%s2376_s7 + $0x1c8] sm:$0xff]  ;;  %282 = vst [vmem:[%s2381_s8 + $0xd8] sm:$0xff] %v281_v27 }
  0x20   : > { %284 = vst [vmem:[%s2381_s8 + $0xe0] sm:$0xff] %v283_v28  ;;  %286 = vst [vmem:[%s2381_s8 + $0xe8] sm:$0xff] %v285_v29  ;;  %v287_v30 = vld [vmem:[%s2376_s7 + $0x1e0] sm:$0xff]  ;;  %v289_v31 = vld [vmem:[%s2376_s7 + $0x1e8] sm:$0xff] }
  0x21   : > { %288 = vst [vmem:[%s2381_s8 + $0xf0] sm:$0xff] %v287_v30  ;;  %290 = vst [vmem:[%s2381_s8 + $0xf8] sm:$0xff] %v289_v31 }
  0x22 PF: > { %p1772_p6 = scmp.ge.s32.totalorder %s2298_s22, 1  ;;  %p312_p7 = scmp.lt.s32.totalorder %s2298_s22, 3 }
  0x24   : > { %p313_p8 = pnand %p1772_p6, %p312_p7 }
  0x25   : > { %s319_s9 = sand.u32 (!%p313_p8), 1, %s2282_s18   ;;  %s1774_s10 = sshll.u32 (!%p313_p8), %s2290_s20, 1 }
  0x26   : > { %316 = sbr.rel (%p313_p8) target bundleno = 694 (0x2b6), region = 59  ;;  %s1773_s11 = sshll.u32 (!%p313_p8), %s319_s9, 8 }
  0x27   : > { %p368_p9 = scmp.lt.s32.totalorder (!%p313_p8), %s1774_s10, 3  ;;  %s1775_s12 = sshll.u32 (!%p313_p8), %s2290_s20, 5 }
  0x28   : > { %p373_p10 = scmp.lt.s32.totalorder (!%p313_p8), %s1775_s12, 63  ;;  %s2460_s18 = scalar_lea.vmem (!%p313_p8), [#allocation3], %s1773_s11 }
  0x29   : > { %p1777_p11 = scmp.ne.s32.totalorder (!%p313_p8), %s2290_s20, 0 }
  0x2d   : > { %s3178_s10 = smov (!%p368_p9, %s1774_s10), 3  ;;  %s3180_s12 = smov (!%p373_p10, %s1775_s12), 63 }
  0x2e   : > { %s370_s15 = scalar_lea.vmem %s3167_s2, %s3178_s10  ;;  %s1776_s16 = sshll.u32 %s3180_s12, 3  ;;  %v2300_v32 = vmov (!%p1777_p11), 0.0  }
  0x2f   : > { %s2458_s25 = scalar_lea.vmem %s3168_s3, %s1776_s16  ;;  %387 = sbr.rel (%p1777_p11) target bundleno = 63 (0x3f), region = 67  ;;  %388 = vst [vmem:[#allocation2] sm:$0xff] (!%p1777_p11), %v2300_v32  ;;  %389 = vst [vmem:[#allocation2 + $0x8] sm:$0xff] (!%p1777_p11), %v2300_v32 }
  0x30   : > { %390 = vst [vmem:[#allocation2 + $0x10] sm:$0xff] (!%p1777_p11), %v2300_v32  ;;  %391 = vst [vmem:[#allocation2 + $0x18] sm:$0xff] (!%p1777_p11), %v2300_v32 }
  0x31   : > { %392 = vst [vmem:[#allocation2 + $0x20] sm:$0xff] (!%p1777_p11), %v2300_v32  ;;  %393 = vst [vmem:[#allocation2 + $0x28] sm:$0xff] (!%p1777_p11), %v2300_v32 }
  0x32   : > { %394 = vst [vmem:[#allocation2 + $0x30] sm:$0xff] (!%p1777_p11), %v2300_v32  ;;  %395 = vst [vmem:[#allocation2 + $0x38] sm:$0xff] (!%p1777_p11), %v2300_v32 }
  0x33   : > { %396 = vst [vmem:[#allocation2 + $0x40] sm:$0xff] (!%p1777_p11), %v2300_v32  ;;  %397 = vst [vmem:[#allocation2 + $0x48] sm:$0xff] (!%p1777_p11), %v2300_v32 }
  0x34   : > { %398 = vst [vmem:[#allocation2 + $0x50] sm:$0xff] (!%p1777_p11), %v2300_v32  ;;  %399 = vst [vmem:[#allocation2 + $0x58] sm:$0xff] (!%p1777_p11), %v2300_v32 }
  0x35   : > { %400 = vst [vmem:[#allocation2 + $0x60] sm:$0xff] (!%p1777_p11), %v2300_v32  ;;  %401 = vst [vmem:[#allocation2 + $0x68] sm:$0xff] (!%p1777_p11), %v2300_v32 }
  0x36   : > { %402 = vst [vmem:[#allocation2 + $0x70] sm:$0xff] %v2300_v32  ;;  %403 = vst [vmem:[#allocation2 + $0x78] sm:$0xff] %v2300_v32 }
  0x37   : > { %404 = vst [vmem:[#allocation2 + $0x80] sm:$0xff] %v2300_v32  ;;  %405 = vst [vmem:[#allocation2 + $0x88] sm:$0xff] %v2300_v32 }
  0x38   : > { %406 = vst [vmem:[#allocation2 + $0x90] sm:$0xff] %v2300_v32  ;;  %407 = vst [vmem:[#allocation2 + $0x98] sm:$0xff] %v2300_v32 }
  0x39   : > { %408 = vst [vmem:[#allocation2 + $0xa0] sm:$0xff] %v2300_v32  ;;  %409 = vst [vmem:[#allocation2 + $0xa8] sm:$0xff] %v2300_v32 }
  0x3a   : > { %410 = vst [vmem:[#allocation2 + $0xb0] sm:$0xff] %v2300_v32  ;;  %411 = vst [vmem:[#allocation2 + $0xb8] sm:$0xff] %v2300_v32 }
  0x3b   : > { %412 = vst [vmem:[#allocation2 + $0xc0] sm:$0xff] %v2300_v32  ;;  %413 = vst [vmem:[#allocation2 + $0xc8] sm:$0xff] %v2300_v32 }
  0x3c   : > { %414 = vst [vmem:[#allocation2 + $0xd0] sm:$0xff] %v2300_v32  ;;  %415 = vst [vmem:[#allocation2 + $0xd8] sm:$0xff] %v2300_v32 }
  0x3d   : > { %416 = vst [vmem:[#allocation2 + $0xe0] sm:$0xff] %v2300_v32  ;;  %417 = vst [vmem:[#allocation2 + $0xe8] sm:$0xff] %v2300_v32 }
  0x3e   : > { %418 = vst [vmem:[#allocation2 + $0xf0] sm:$0xff] %v2300_v32  ;;  %419 = vst [vmem:[#allocation2 + $0xf8] sm:$0xff] %v2300_v32 }
  0x3f PF: > { %v453_v33 = vld [vmem:[%s2460_s18 + $0x8] sm:$0xff]  ;;  %v455_v34 = vld [vmem:[%s2460_s18 + $0x18] sm:$0xff]  ;;  %v452_v35 = vld [vmem:[%s2460_s18] sm:$0xff]  ;;  %v2301_v40 = vmov 0.0   ;;  %v2302_v22 = vmov 0.0|0.0   ;;  %p1842_p12 = scmp.ne.s32.totalorder %s2290_s20, 1 }
  0x40   : > { %v1849_v36 = vpack.c.bf16 %v455_v34, %v453_v33  ;;  %v454_v37 = vld [vmem:[%s2460_s18 + $0x10] sm:$0xff]  ;;  %v457_v38 = vld [vmem:[%s2460_s18 + $0x28] sm:$0xff]  ;;  %v459_v39 = vld [vmem:[%s2460_s18 + $0x38] sm:$0xff]  ;;  %560 = vmatprep.mubr.f32.mxu0 %v2301_v40  ;;  %1929 = vmatprep.subr.bf16.mxu1 %v2302_v22 }
  0x41   : > { %v1851_v41 = vpack.c.bf16 %v454_v37, %v452_v35  ;;  %v1853_v42 = vpack.c.bf16 %v459_v39, %v457_v38  ;;  %v456_v43 = vld [vmem:[%s2460_s18 + $0x20] sm:$0xff]  ;;  %v458_v44 = vld [vmem:[%s2460_s18 + $0x30] sm:$0xff]  ;;  %v461_v45 = vld [vmem:[%s2460_s18 + $0x48] sm:$0xff] }
  0x42   : > { %1850 = vmatprep.subr.bf16.mxu0 %v1849_v36  ;;  %v463_v46 = vld [vmem:[%s2460_s18 + $0x58] sm:$0xff]  ;;  %v1855_v47 = vpack.c.bf16 %v458_v44, %v456_v43  ;;  %v460_v49 = vld [vmem:[%s2460_s18 + $0x40] sm:$0xff]  ;;  %v462_v50 = vld [vmem:[%s2460_s18 + $0x50] sm:$0xff] }
  0x43   : > { %1852 = vmatpush1.bf16.msra.mxu0 %v1851_v41  ;;  %v1857_v48 = vpack.c.bf16 %v463_v46, %v461_v45  ;;  %v465_v51 = vld [vmem:[%s2460_s18 + $0x68] sm:$0xff]  ;;  %v467_v52 = vld [vmem:[%s2460_s18 + $0x78] sm:$0xff]  ;;  %v1859_v53 = vpack.c.bf16 %v462_v50, %v460_v49  ;;  %v464_v55 = vld [vmem:[%s2460_s18 + $0x60] sm:$0xff] }
  0x44   : > { %1854 = vmatprep.subr.bf16.mxu0 %v1853_v42  ;;  %v1861_v54 = vpack.c.bf16 %v467_v52, %v465_v51  ;;  %v466_v56 = vld [vmem:[%s2460_s18 + $0x70] sm:$0xff]  ;;  %v469_v57 = vld [vmem:[%s2460_s18 + $0x88] sm:$0xff]  ;;  %v471_v58 = vld [vmem:[%s2460_s18 + $0x98] sm:$0xff] }
  0x45   : > { %v1863_v59 = vpack.c.bf16 %v466_v56, %v464_v55  ;;  %v1865_v60 = vpack.c.bf16 %v471_v58, %v469_v57  ;;  %v468_v61 = vld [vmem:[%s2460_s18 + $0x80] sm:$0xff]  ;;  %v470_v62 = vld [vmem:[%s2460_s18 + $0x90] sm:$0xff]  ;;  %v473_v63 = vld [vmem:[%s2460_s18 + $0xa8] sm:$0xff] }
  0x46   : > { %v475_v0 = vld [vmem:[%s2460_s18 + $0xb8] sm:$0xff]  ;;  %v1867_v1 = vpack.c.bf16 %v470_v62, %v468_v61  ;;  %v472_v3 = vld [vmem:[%s2460_s18 + $0xa0] sm:$0xff]  ;;  %v474_v4 = vld [vmem:[%s2460_s18 + $0xb0] sm:$0xff] }
  0x47   : > { %1856 = vmatpush1.bf16.msra.mxu0 %v1855_v47  ;;  %v1869_v2 = vpack.c.bf16 %v475_v0, %v473_v63  ;;  %v477_v5 = vld [vmem:[%s2460_s18 + $0xc8] sm:$0xff]  ;;  %v479_v6 = vld [vmem:[%s2460_s18 + $0xd8] sm:$0xff]  ;;  %v1871_v7 = vpack.c.bf16 %v474_v4, %v472_v3  ;;  %v476_v9 = vld [vmem:[%s2460_s18 + $0xc0] sm:$0xff] }
  0x48   : > { %1858 = vmatprep.subr.bf16.mxu0 %v1857_v48  ;;  %v1873_v8 = vpack.c.bf16 %v479_v6, %v477_v5  ;;  %v478_v10 = vld [vmem:[%s2460_s18 + $0xd0] sm:$0xff]  ;;  %v481_v11 = vld [vmem:[%s2460_s18 + $0xe8] sm:$0xff]  ;;  %v483_v12 = vld [vmem:[%s2460_s18 + $0xf8] sm:$0xff] }
  0x49   : > { %v1875_v13 = vpack.c.bf16 %v478_v10, %v476_v9  ;;  %v1877_v14 = vpack.c.bf16 %v483_v12, %v481_v11  ;;  %v480_v15 = vld [vmem:[%s2460_s18 + $0xe0] sm:$0xff]  ;;  %v482_v16 = vld [vmem:[%s2460_s18 + $0xf0] sm:$0xff]  ;;  %v1234_v19 = vld [vmem:[%s2458_s25 + $0x8] sm:$0xff] }
  0x4a   : > { %v1879_v17 = vpack.c.bf16 %v482_v16, %v480_v15  ;;  %v1233_v18 = vld [vmem:[%s2458_s25] sm:$0xff]  ;;  %v1235_v23 = vld [vmem:[%s2458_s25 + $0x10] sm:$0xff]  ;;  %v1236_v24 = vld [vmem:[%s2458_s25 + $0x18] sm:$0xff] }
  0x4b   : > { %1860 = vmatpush1.bf16.msra.mxu0 %v1859_v53  ;;  %v420_v20 = vld [vmem:[%s3165_s0] sm:$0xff]  ;;  %v1882_v21 = vpack.c.bf16 %v1234_v19, %v1233_v18  ;;  %v421_v25 = vld [vmem:[%s3165_s0 + $0x8] sm:$0xff]  ;;  %v1885_v26 = vpack.c.bf16 %v1236_v24, %v1235_v23  ;;  %v422_v29 = vld [vmem:[%s3165_s0 + $0x10] sm:$0xff] }
  0x4c   : > { %1862 = vmatprep.subr.bf16.mxu0 %v1861_v54  ;;  %v1237_v27 = vld [vmem:[%s2458_s25 + $0x20] sm:$0xff]  ;;  %v1238_v28 = vld [vmem:[%s2458_s25 + $0x28] sm:$0xff]  ;;  %v1239_v31 = vld [vmem:[%s2458_s25 + $0x30] sm:$0xff] }
  0x4d   : > { %1945 = vmatpush1.bf16.msra.mxu1 %v1882_v21  ;;  %v1888_v30 = vpack.c.bf16 %v1238_v28, %v1237_v27  ;;  %v1240_v32 = vld [vmem:[%s2458_s25 + $0x38] sm:$0xff]  ;;  %v1241_v35 = vld [vmem:[%s2458_s25 + $0x40] sm:$0xff]  ;;  %v1242_v36 = vld [vmem:[%s2458_s25 + $0x48] sm:$0xff] }
  0x4e   : > { %1930 = vmatprep.subr.bf16.mxu1 %v2302_v22  ;;  %v423_v33 = vld [vmem:[%s3165_s0 + $0x18] sm:$0xff]  ;;  %v1891_v34 = vpack.c.bf16 %v1240_v32, %v1239_v31  ;;  %v424_v37 = vld [vmem:[%s3165_s0 + $0x20] sm:$0xff]  ;;  %v1894_v38 = vpack.c.bf16 %v1242_v36, %v1241_v35  ;;  %v1243_v39 = vld [vmem:[%s2458_s25 + $0x50] sm:$0xff] }
  0x4f   : > { %1864 = vmatpush1.bf16.msra.mxu0 %v1863_v59  ;;  %v1244_v41 = vld [vmem:[%s2458_s25 + $0x58] sm:$0xff]  ;;  %v425_v42 = vld [vmem:[%s3165_s0 + $0x28] sm:$0xff]  ;;  %v1245_v44 = vld [vmem:[%s2458_s25 + $0x60] sm:$0xff] }
  0x50   : > { %1866 = vmatprep.subr.bf16.mxu0 %v1865_v60  ;;  %v1897_v43 = vpack.c.bf16 %v1244_v41, %v1243_v39  ;;  %v1246_v45 = vld [vmem:[%s2458_s25 + $0x68] sm:$0xff]  ;;  %v426_v46 = vld [vmem:[%s3165_s0 + $0x30] sm:$0xff]  ;;  %v1248_v49 = vld [vmem:[%s2458_s25 + $0x78] sm:$0xff] }
  0x51   : > { %1946 = vmatpush1.bf16.msra.mxu1 %v1885_v26  ;;  %v1900_v47 = vpack.c.bf16 %v1246_v45, %v1245_v44  ;;  %v1247_v48 = vld [vmem:[%s2458_s25 + $0x70] sm:$0xff]  ;;  %v427_v50 = vld [vmem:[%s3165_s0 + $0x38] sm:$0xff]  ;;  %v428_v52 = vld [vmem:[%s3165_s0 + $0x40] sm:$0xff] }
  0x52   : > { %1931 = vmatprep.subr.bf16.mxu1 %v2302_v22  ;;  %v1903_v51 = vpack.c.bf16 %v1248_v49, %v1247_v48  ;;  %v429_v53 = vld [vmem:[%s3165_s0 + $0x48] sm:$0xff]  ;;  %v430_v54 = vld [vmem:[%s3165_s0 + $0x50] sm:$0xff]  ;;  %v431_v55 = vld [vmem:[%s3165_s0 + $0x58] sm:$0xff] }
  0x53   : > { %1868 = vmatpush1.bf16.msra.mxu0 %v1867_v1  ;;  %v432_v56 = vld [vmem:[%s3165_s0 + $0x60] sm:$0xff]  ;;  %v433_v57 = vld [vmem:[%s3165_s0 + $0x68] sm:$0xff]  ;;  %v434_v58 = vld [vmem:[%s3165_s0 + $0x70] sm:$0xff] }
  0x54   : > { %1870 = vmatprep.subr.bf16.mxu0 %v1869_v2  ;;  %v435_v59 = vld [vmem:[%s3165_s0 + $0x78] sm:$0xff]  ;;  %v436_v60 = vld [vmem:[%s3165_s0 + $0x80] sm:$0xff]  ;;  %v437_v61 = vld [vmem:[%s3165_s0 + $0x88] sm:$0xff] }
  0x55   : > { %1947 = vmatpush1.bf16.msra.mxu1 %v1888_v30  ;;  %v438_v62 = vld [vmem:[%s3165_s0 + $0x90] sm:$0xff]  ;;  %v439_v63 = vld [vmem:[%s3165_s0 + $0x98] sm:$0xff]  ;;  %v440_v0 = vld [vmem:[%s3165_s0 + $0xa0] sm:$0xff] }
  0x56   : > { %1932 = vmatprep.subr.bf16.mxu1 %v2302_v22  ;;  %v441_v1 = vld [vmem:[%s3165_s0 + $0xa8] sm:$0xff]  ;;  %v1249_v2 = vld [vmem:[%s2458_s25 + $0x80] sm:$0xff]  ;;  %v442_v5 = vld [vmem:[%s3165_s0 + $0xb0] sm:$0xff] }
  0x57   : > { %1872 = vmatpush1.bf16.msra.mxu0 %v1871_v7  ;;  %v1250_v3 = vld [vmem:[%s2458_s25 + $0x88] sm:$0xff]  ;;  %v1251_v6 = vld [vmem:[%s2458_s25 + $0x90] sm:$0xff]  ;;  %v1252_v7 = vld [vmem:[%s2458_s25 + $0x98] sm:$0xff] }
  0x58   : > { %1874 = vmatprep.subr.bf16.mxu0 %v1873_v8  ;;  %v1906_v4 = vpack.c.bf16 %v1250_v3, %v1249_v2  ;;  %v1909_v8 = vpack.c.bf16 %v1252_v7, %v1251_v6  ;;  %v443_v9 = vld [vmem:[%s3165_s0 + $0xb8] sm:$0xff]  ;;  %v1253_v10 = vld [vmem:[%s2458_s25 + $0xa0] sm:$0xff]  ;;  %v1254_v11 = vld [vmem:[%s2458_s25 + $0xa8] sm:$0xff] }
  0x59   : > { %1948 = vmatpush1.bf16.msra.mxu1 %v1891_v34  ;;  %v1912_v12 = vpack.c.bf16 %v1254_v11, %v1253_v10  ;;  %v1256_v15 = vld [vmem:[%s2458_s25 + $0xb8] sm:$0xff]  ;;  %v445_v16 = vld [vmem:[%s3165_s0 + $0xc8] sm:$0xff]  ;;  %v1257_v18 = vld [vmem:[%s2458_s25 + $0xc0] sm:$0xff] }
  0x5a   : > { %1933 = vmatprep.subr.bf16.mxu1 %v2302_v22  ;;  %v1258_v19 = vld [vmem:[%s2458_s25 + $0xc8] sm:$0xff]  ;;  %v1259_v23 = vld [vmem:[%s2458_s25 + $0xd0] sm:$0xff]  ;;  %v1260_v24 = vld [vmem:[%s2458_s25 + $0xd8] sm:$0xff] }
  0x5b   : > { %1876 = vmatpush1.bf16.msra.mxu0 %v1875_v13  ;;  %v444_v13 = vld [vmem:[%s3165_s0 + $0xc0] sm:$0xff]  ;;  %v1262_v28 = vld [vmem:[%s2458_s25 + $0xe8] sm:$0xff]  ;;  %v1263_v31 = vld [vmem:[%s2458_s25 + $0xf0] sm:$0xff] }
  0x5c   : > { %1878 = vmatprep.subr.bf16.mxu0 %v1877_v14  ;;  %v1255_v14 = vld [vmem:[%s2458_s25 + $0xb0] sm:$0xff]  ;;  %v1261_v27 = vld [vmem:[%s2458_s25 + $0xe0] sm:$0xff]  ;;  %v1264_v32 = vld [vmem:[%s2458_s25 + $0xf8] sm:$0xff] }
  0x5d   : > { %1949 = vmatpush1.bf16.msra.mxu1 %v1894_v38  ;;  %v450_v35 = vld [vmem:[%s3165_s0 + $0xf0] sm:$0xff]  ;;  %v451_v36 = vld [vmem:[%s3165_s0 + $0xf8] sm:$0xff]  ;;  %v484_v39 = vld [vmem:[%s370_s15] sm:$0x3] }
  0x5e   : > { %1934 = vmatprep.subr.bf16.mxu1 %v2302_v22 }
  0x5f   : > { %1880 = vmatpush1.bf16.msra.mxu0 %v1879_v17  ;;  %v1915_v17 = vpack.c.bf16 %v1256_v15, %v1255_v14 }
  0x60   : > { %1881 = vmatprep.subr.bf16.mxu0 %v2302_v22 }
  0x61   : > { %1950 = vmatpush1.bf16.msra.mxu1 %v1897_v43 }
  0x62   : > { %561 = vmatmul.mubr.f32.vlgmr.msra.gmra.mrb[0].mxu0 %v420_v20  ;;  %1935 = vmatprep.subr.bf16.mxu1 %v2302_v22  ;;  %v446_v20 = vld [vmem:[%s3165_s0 + $0xd0] sm:$0xff] }
  0x63   : > { %566 = vmatprep.mubr.f32.mxu0 %v2301_v40  ;;  %1883 = vmatpush1.bf16.msra.mxu0 %v1882_v21  ;;  %v1918_v21 = vpack.c.bf16 %v1258_v19, %v1257_v18 }
  0x64   : > { %1884 = vmatprep.subr.bf16.mxu0 %v2302_v22 }
  0x65   : > { %1951 = vmatpush1.bf16.msra.mxu1 %v1900_v47 }
  0x66   : > { %567 = vmatmul.mubr.f32.gmra.mrb[2].mxu0 %v421_v25  ;;  %1936 = vmatprep.subr.bf16.mxu1 %v2302_v22  ;;  %v447_v25 = vld [vmem:[%s3165_s0 + $0xd8] sm:$0xff] }
  0x67   : > { %572 = vmatprep.mubr.f32.mxu0 %v2301_v40  ;;  %1886 = vmatpush1.bf16.msra.mxu0 %v1885_v26  ;;  %v1921_v26 = vpack.c.bf16 %v1260_v24, %v1259_v23 }
  0x68   : > { %1887 = vmatprep.subr.bf16.mxu0 %v2302_v22 }
  0x69   : > { %1952 = vmatpush1.bf16.msra.mxu1 %v1903_v51 }
  0x6a   : > { %573 = vmatmul.mubr.f32.gmra.mrb[4].mxu0 %v422_v29  ;;  %1937 = vmatprep.subr.bf16.mxu1 %v2302_v22  ;;  %v448_v29 = vld [vmem:[%s3165_s0 + $0xe0] sm:$0xff] }
  0x6b   : > { %578 = vmatprep.mubr.f32.mxu0 %v2301_v40  ;;  %1889 = vmatpush1.bf16.msra.mxu0 %v1888_v30  ;;  %v1924_v30 = vpack.c.bf16 %v1262_v28, %v1261_v27 }
  0x6c   : > { %1890 = vmatprep.subr.bf16.mxu0 %v2302_v22 }
  0x6d   : > { %1953 = vmatpush1.bf16.msra.mxu1 %v1906_v4 }
  0x6e   : > { %579 = vmatmul.mubr.f32.gmra.mrb[6].mxu0 %v423_v33  ;;  %1938 = vmatprep.subr.bf16.mxu1 %v2302_v22  ;;  %v449_v33 = vld [vmem:[%s3165_s0 + $0xe8] sm:$0xff] }
  0x6f   : > { %584 = vmatprep.mubr.f32.mxu0 %v2301_v40  ;;  %1892 = vmatpush1.bf16.msra.mxu0 %v1891_v34  ;;  %v1927_v34 = vpack.c.bf16 %v1264_v32, %v1263_v31 }
  0x70   : > { %1893 = vmatprep.subr.bf16.mxu0 %v2302_v22 }
  0x71   : > { %1954 = vmatpush1.bf16.msra.mxu1 %v1909_v8 }
  0x72   : > { %585 = vmatmul.mubr.f32.gmra.mrb[8].mxu0 %v424_v37  ;;  %1939 = vmatprep.subr.bf16.mxu1 %v2302_v22  ;;  %v486_v37 = vlaneseq }
  0x73   : > { %590 = vmatprep.mubr.f32.mxu0 %v2301_v40  ;;  %1895 = vmatpush1.bf16.msra.mxu0 %v1894_v38 }
  0x74   : > { %1896 = vmatprep.subr.bf16.mxu0 %v2302_v22  ;;  %v487_v38 = vshrl.u32 %v486_v37, 7 }
  0x75   : > { %1955 = vmatpush1.bf16.msra.mxu1 %v1912_v12 }
  0x76   : > { %591 = vmatmul.mubr.f32.gmra.mrb[10].mxu0 %v425_v42  ;;  %1940 = vmatprep.subr.bf16.mxu1 %v2302_v22  ;;  %v492_v41 = vsub.s32 1, %v487_v38 }
  0x77   : > { %596 = vmatprep.mubr.f32.mxu0 %v2301_v40  ;;  %1898 = vmatpush1.bf16.msra.mxu0 %v1897_v43 }
  0x78   : > { %1899 = vmatprep.subr.bf16.mxu0 %v2302_v22  ;;  %v2694_v43 = vrot.slane %v484_v39, %v492_v41 }
  0x79   : > { %1956 = vmatpush1.bf16.msra.mxu1 %v1915_v17 }
  0x7a   : > { %597 = vmatmul.mubr.f32.gmra.mrb[12].mxu0 %v426_v46  ;;  %1941 = vmatprep.subr.bf16.mxu1 %v2302_v22 }
  0x7b   : > { %602 = vmatprep.mubr.f32.mxu0 %v2301_v40  ;;  %1901 = vmatpush1.bf16.msra.mxu0 %v1900_v47 }
  0x7c   : > { %1902 = vmatprep.subr.bf16.mxu0 %v2302_v22 }
  0x7d   : > { %1957 = vmatpush1.bf16.msra.mxu1 %v1918_v21 }
  0x7e   : > { %603 = vmatmul.mubr.f32.gmra.mrb[14].mxu0 %v427_v50  ;;  %1942 = vmatprep.subr.bf16.mxu1 %v2302_v22 }
  0x7f   : > { %608 = vmatprep.mubr.f32.mxu0 %v2301_v40  ;;  %1904 = vmatpush1.bf16.msra.mxu0 %v1903_v51 }
  0x80   : > { %1905 = vmatprep.subr.bf16.mxu0 %v2302_v22 }
  0x81   : > { %1958 = vmatpush1.bf16.msra.mxu1 %v1921_v26 }
  0x82   : > { %609 = vmatmul.mubr.f32.gmra.mrb[16].mxu0 %v428_v52  ;;  %1943 = vmatprep.subr.bf16.mxu1 %v2302_v22 }
  0x83   : > { %614 = vmatprep.mubr.f32.mxu0 %v2301_v40  ;;  %1907 = vmatpush1.bf16.msra.mxu0 %v1906_v4 }
  0x84   : > { %1908 = vmatprep.subr.bf16.mxu0 %v2302_v22 }
  0x85   : > { %1959 = vmatpush1.bf16.msra.mxu1 %v1924_v30 }
  0x86   : > { %615 = vmatmul.mubr.f32.gmra.mrb[18].mxu0 %v429_v53  ;;  %1944 = vmatprep.subr.bf16.mxu1 %v2302_v22 }
  0x87   : > { %620 = vmatprep.mubr.f32.mxu0 %v2301_v40  ;;  %1910 = vmatpush1.bf16.msra.mxu0 %v1909_v8 }
  0x88   : > { %1911 = vmatprep.subr.bf16.mxu0 %v2302_v22 }
  0x89   : > { %1960 = vmatpush1.bf16.msra.mxu1 %v1927_v34 }
  0x8a   : > { %621 = vmatmul.mubr.f32.gmra.mrb[20].mxu0 %v430_v54 }
  0x8b   : > { %626 = vmatprep.mubr.f32.mxu0 %v2301_v40  ;;  %1913 = vmatpush1.bf16.msra.mxu0 %v1912_v12 }
  0x8c   : > { %1914 = vmatprep.subr.bf16.mxu0 %v2302_v22 }
  0x8e   : > { %627 = vmatmul.mubr.f32.gmra.mrb[22].mxu0 %v431_v55 }
  0x8f   : > { %632 = vmatprep.mubr.f32.mxu0 %v2301_v40  ;;  %1916 = vmatpush1.bf16.msra.mxu0 %v1915_v17 }
  0x90   : > { %1917 = vmatprep.subr.bf16.mxu0 %v2302_v22 }
  0x92   : > { %633 = vmatmul.mubr.f32.gmra.mrb[24].mxu0 %v432_v56 }
  0x93   : > { %638 = vmatprep.mubr.f32.mxu0 %v2301_v40  ;;  %1919 = vmatpush1.bf16.msra.mxu0 %v1918_v21 }
  0x94   : > { %1920 = vmatprep.subr.bf16.mxu0 %v2302_v22 }
  0x96   : > { %639 = vmatmul.mubr.f32.gmra.mrb[26].mxu0 %v433_v57 }
  0x97   : > { %644 = vmatprep.mubr.f32.mxu0 %v2301_v40  ;;  %1922 = vmatpush1.bf16.msra.mxu0 %v1921_v26 }
  0x98   : > { %1923 = vmatprep.subr.bf16.mxu0 %v2302_v22 }
  0x9a   : > { %645 = vmatmul.mubr.f32.gmra.mrb[28].mxu0 %v434_v58 }
  0x9b   : > { %650 = vmatprep.mubr.f32.mxu0 %v2301_v40  ;;  %1925 = vmatpush1.bf16.msra.mxu0 %v1924_v30 }
  0x9c   : > { %1926 = vmatprep.subr.bf16.mxu0 %v2302_v22  ;;  %v488_v22 = vsub.s32 0, %v487_v38 }
  0x9e   : > { %651 = vmatmul.mubr.f32.gmra.mrb[30].mxu0 %v435_v59  ;;  %v2692_v42 = vrot.slane %v484_v39, %v488_v22 }
  0x9f   : > { %656 = vmatprep.mubr.f32.mxu0 %v2301_v40  ;;  %1928 = vmatpush1.bf16.msra.mxu0 %v1927_v34 }
  0xa2   : > { %657 = vmatmul.mubr.f32.gmra.mrb[32].mxu0 %v436_v60 }
  0xa3   : > { %662 = vmatprep.mubr.f32.mxu0 %v2301_v40 }
  0xa6   : > { %663 = vmatmul.mubr.f32.gmra.mrb[34].mxu0 %v437_v61 }
  0xa7   : > { %668 = vmatprep.mubr.f32.mxu0 %v2301_v40 }
  0xaa   : > { %669 = vmatmul.mubr.f32.gmra.mrb[36].mxu0 %v438_v62 }
  0xab   : > { %674 = vmatprep.mubr.f32.mxu0 %v2301_v40 }
  0xae   : > { %675 = vmatmul.mubr.f32.gmra.mrb[38].mxu0 %v439_v63 }
  0xaf   : > { %680 = vmatprep.mubr.f32.mxu0 %v2301_v40 }
  0xb2   : > { %681 = vmatmul.mubr.f32.gmra.mrb[40].mxu0 %v440_v0 }
  0xb3   : > { %686 = vmatprep.mubr.f32.mxu0 %v2301_v40 }
  0xb6   : > { %687 = vmatmul.mubr.f32.gmra.mrb[42].mxu0 %v441_v1 }
  0xb7   : > { %692 = vmatprep.mubr.f32.mxu0 %v2301_v40 }
  0xba   : > { %693 = vmatmul.mubr.f32.gmra.mrb[44].mxu0 %v442_v5 }
  0xbb   : > { %698 = vmatprep.mubr.f32.mxu0 %v2301_v40 }
  0xbe   : > { %699 = vmatmul.mubr.f32.gmra.mrb[46].mxu0 %v443_v9 }
  0xbf   : > { %704 = vmatprep.mubr.f32.mxu0 %v2301_v40 }
  0xc2   : > { %705 = vmatmul.mubr.f32.gmra.mrb[48].mxu0 %v444_v13 }
  0xc3   : > { %710 = vmatprep.mubr.f32.mxu0 %v2301_v40 }
  0xc6   : > { %711 = vmatmul.mubr.f32.gmra.mrb[50].mxu0 %v445_v16 }
  0xc7   : > { %716 = vmatprep.mubr.f32.mxu0 %v2301_v40 }
  0xca   : > { %717 = vmatmul.mubr.f32.gmra.mrb[52].mxu0 %v446_v20 }
  0xcb   : > { %722 = vmatprep.mubr.f32.mxu0 %v2301_v40 }
  0xce   : > { %723 = vmatmul.mubr.f32.gmra.mrb[54].mxu0 %v447_v25 }
  0xcf   : > { %728 = vmatprep.mubr.f32.mxu0 %v2301_v40 }
  0xd2   : > { %729 = vmatmul.mubr.f32.gmra.mrb[56].mxu0 %v448_v29 }
  0xd3   : > { %734 = vmatprep.mubr.f32.mxu0 %v2301_v40 }
  0xd6   : > { %735 = vmatmul.mubr.f32.gmra.mrb[58].mxu0 %v449_v33 }
  0xd7   : > { %740 = vmatprep.mubr.f32.mxu0 %v2301_v40 }
  0xda   : > { %741 = vmatmul.mubr.f32.gmra.mrb[60].mxu0 %v450_v35 }
  0xdb   : > { %746 = vmatprep.mubr.f32.mxu0 %v2301_v40 }
  0xde   : > { %747 = vmatmul.mubr.f32.gmra.mrb[62].mxu0 %v451_v36 }
 0x135   : > { %v562_v44 = vpop.f32.mrb[0].mxu0 }
 0x136   : > { %v2697_v40 = vadd.f32 %v562_v44, %v2692_v42  ;;  %v564_v45 = vpop.f32.mrb[1].mxu0 }
 0x137   : > { %v2700_v46 = vadd.f32 %v564_v45, %v2694_v43 }
 0x138   : > { %v1778_v47 = vmul.f32 -1.442695, %v2697_v40 }
 0x139   : > { %v1779_v48 = vmul.f32 -1.442695, %v2700_v46  ;;  %v568_v49 = vpop.f32.mrb[2].mxu0 }
 0x13a   : > { %2004 = vpow2.f32 %v1778_v47  ;;  %v2705_v50 = vadd.f32 %v568_v49, %v2692_v42  ;;  %v570_v51 = vpop.f32.mrb[3].mxu0 }
 0x13b   : > { %2006 = vpow2.f32 %v1779_v48  ;;  %v2708_v52 = vadd.f32 %v570_v51, %v2694_v43 }
 0x13c   : > { %v1780_v53 = vmul.f32 -1.442695, %v2705_v50 }
 0x13d   : > { %v1781_v54 = vmul.f32 -1.442695, %v2708_v52  ;;  %v574_v55 = vpop.f32.mrb[4].mxu0 }
 0x13e   : > { %2008 = vpow2.f32 %v1780_v53  ;;  %v2713_v56 = vadd.f32 %v574_v55, %v2692_v42  ;;  %v576_v57 = vpop.f32.mrb[5].mxu0 }
 0x13f   : > { %2010 = vpow2.f32 %v1781_v54  ;;  %v2716_v58 = vadd.f32 %v576_v57, %v2694_v43 }
 0x140   : > { %v1782_v59 = vmul.f32 -1.442695, %v2713_v56 }
 0x141   : > { %v1783_v60 = vmul.f32 -1.442695, %v2716_v58  ;;  %v580_v61 = vpop.f32.mrb[6].mxu0 }
 0x142   : > { %2012 = vpow2.f32 %v1782_v59  ;;  %v2721_v62 = vadd.f32 %v580_v61, %v2692_v42  ;;  %v582_v63 = vpop.f32.mrb[7].mxu0 }
 0x143   : > { %2014 = vpow2.f32 %v1783_v60  ;;  %v2724_v0 = vadd.f32 %v582_v63, %v2694_v43 }
 0x144   : > { %v2005_v1 = vpop.eup %2004  ;;  %v1784_v2 = vmul.f32 -1.442695, %v2721_v62 }
 0x145   : > { %v2007_v3 = vpop.eup %2006  ;;  %v945_v4 = vadd.f32 1.0, %v2005_v1  ;;  %v1785_v5 = vmul.f32 -1.442695, %v2724_v0  ;;  %v586_v6 = vpop.f32.mrb[8].mxu0 }
 0x146   : > { %v946_v7 = vadd.f32 1.0, %v2007_v3  ;;  %2016 = vpow2.f32 %v1784_v2  ;;  %v2729_v8 = vadd.f32 %v586_v6, %v2692_v42  ;;  %v588_v9 = vpop.f32.mrb[9].mxu0 }
 0x147   : > { %2018 = vrcp.f32 %v945_v4  ;;  %v2732_v10 = vadd.f32 %v588_v9, %v2694_v43 }
 0x148   : > { %v2009_v11 = vpop.eup %2008  ;;  %2020 = vrcp.f32 %v946_v7  ;;  %v1786_v12 = vmul.f32 -1.442695, %v2729_v8 }
 0x149   : > { %v2011_v13 = vpop.eup %2010  ;;  %v947_v14 = vadd.f32 1.0, %v2009_v11  ;;  %2022 = vpow2.f32 %v1785_v5  ;;  %v1787_v15 = vmul.f32 -1.442695, %v2732_v10  ;;  %v592_v16 = vpop.f32.mrb[10].mxu0 }
 0x14a   : > { %v948_v17 = vadd.f32 1.0, %v2011_v13  ;;  %2024 = vpow2.f32 %v1786_v12  ;;  %v2737_v18 = vadd.f32 %v592_v16, %v2692_v42  ;;  %v594_v19 = vpop.f32.mrb[11].mxu0 }
 0x14b   : > { %2026 = vrcp.f32 %v947_v14  ;;  %v2740_v20 = vadd.f32 %v594_v19, %v2694_v43 }
 0x14c   : > { %v2013_v21 = vpop.eup %2012  ;;  %2028 = vrcp.f32 %v948_v17  ;;  %v1788_v23 = vmul.f32 -1.442695, %v2737_v18 }
 0x14d   : > { %v2015_v24 = vpop.eup %2014  ;;  %v949_v25 = vadd.f32 1.0, %v2013_v21  ;;  %2030 = vpow2.f32 %v1787_v15  ;;  %v1789_v26 = vmul.f32 -1.442695, %v2740_v20  ;;  %v598_v27 = vpop.f32.mrb[12].mxu0 }
 0x14e   : > { %v950_v28 = vadd.f32 1.0, %v2015_v24  ;;  %2032 = vpow2.f32 %v1788_v23  ;;  %v2745_v29 = vadd.f32 %v598_v27, %v2692_v42  ;;  %v600_v30 = vpop.f32.mrb[13].mxu0 }
 0x14f   : > { %2034 = vrcp.f32 %v949_v25  ;;  %v2748_v31 = vadd.f32 %v600_v30, %v2694_v43 }
 0x150   : > { %v2017_v32 = vpop.eup %2016  ;;  %2036 = vrcp.f32 %v950_v28  ;;  %v1790_v33 = vmul.f32 -1.442695, %v2745_v29 }
 0x151   : > { %v2019_v34 = vpop.eup %2018  ;;  %v951_v35 = vadd.f32 1.0, %v2017_v32  ;;  %2038 = vpow2.f32 %v1789_v26  ;;  %v1791_v36 = vmul.f32 -1.442695, %v2748_v31  ;;  %v604_v37 = vpop.f32.mrb[14].mxu0 }
 0x152   : > { %v2021_v38 = vpop.eup %2020  ;;  %2040 = vpow2.f32 %v1790_v33  ;;  %v2753_v22 = vadd.f32 %v604_v37, %v2692_v42  ;;  %v606_v39 = vpop.f32.mrb[15].mxu0  ;;  %v1137_v48 = vmul.f32 %v2019_v34, %v2697_v40 }
 0x153   : > { %v2023_v41 = vpop.eup %2022  ;;  %v1138_v44 = vmul.f32 %v2021_v38, %v2700_v46  ;;  %v2757_v45 = vadd.f32 %v606_v39, %v2694_v43  ;;  %2042 = vpow2.f32 %v1791_v36 }
 0x154   : > { %v2025_v47 = vpop.eup %2024  ;;  %v952_v49 = vadd.f32 1.0, %v2023_v41  ;;  %v1792_v51 = vmul.f32 -1.442695, %v2753_v22  ;;  %2044 = vrcp.f32 %v951_v35 }
 0x155   : > { %v2027_v53 = vpop.eup %2026  ;;  %v953_v54 = vadd.f32 1.0, %v2025_v47  ;;  %v1793_v55 = vmul.f32 -1.442695, %v2757_v45  ;;  %v610_v57 = vpop.f32.mrb[16].mxu0  ;;  %1329 = vmatprep.mubr.f32.mxu0 %v1138_v44 }
 0x156   : > { %v2029_v59 = vpop.eup %2028  ;;  %2046 = vrcp.f32 %v952_v49  ;;  %v2763_v46 = vadd.f32 %v610_v57, %v2692_v42  ;;  %v612_v60 = vpop.f32.mrb[17].mxu0  ;;  %1330 = vmatmul.mubr.f32.vlgmr.msra.gmra.mrb[64].mxu0 %v1137_v48  ;;  %v1139_v2 = vmul.f32 %v2027_v53, %v2705_v50 }
 0x157   : > { %v2031_v61 = vpop.eup %2030  ;;  %v1140_v40 = vmul.f32 %v2029_v59, %v2708_v52  ;;  %2048 = vrcp.f32 %v953_v54  ;;  %v2767_v63 = vadd.f32 %v612_v60, %v2694_v43 }
 0x158   : > { %v2033_v1 = vpop.eup %2032  ;;  %v954_v3 = vadd.f32 1.0, %v2031_v61  ;;  %2050 = vpow2.f32 %v1792_v51  ;;  %v1794_v4 = vmul.f32 -1.442695, %v2763_v46 }
 0x159   : > { %v2035_v5 = vpop.eup %2034  ;;  %v955_v6 = vadd.f32 1.0, %v2033_v1  ;;  %2052 = vpow2.f32 %v1793_v55  ;;  %v1795_v7 = vmul.f32 -1.442695, %v2767_v63  ;;  %v616_v9 = vpop.f32.mrb[18].mxu0  ;;  %1334 = vmatprep.mubr.f32.mxu0 %v1140_v40 }
 0x15a   : > { %v2037_v11 = vpop.eup %2036  ;;  %2054 = vrcp.f32 %v954_v3  ;;  %v2773_v52 = vadd.f32 %v616_v9, %v2692_v42  ;;  %v618_v12 = vpop.f32.mrb[19].mxu0  ;;  %1335 = vmatmul.mubr.f32.gmra.mrb[66].mxu0 %v1139_v2  ;;  %v1141_v16 = vmul.f32 %v2035_v5, %v2713_v56 }
 0x15b   : > { %v2039_v13 = vpop.eup %2038  ;;  %v1142_v50 = vmul.f32 %v2037_v11, %v2716_v58  ;;  %2056 = vrcp.f32 %v955_v6  ;;  %v2777_v14 = vadd.f32 %v618_v12, %v2694_v43 }
 0x15c   : > { %v2041_v15 = vpop.eup %2040  ;;  %v956_v17 = vadd.f32 1.0, %v2039_v13  ;;  %2058 = vpow2.f32 %v1794_v4  ;;  %v1796_v19 = vmul.f32 -1.442695, %v2773_v52 }
 0x15d   : > { %v957_v21 = vadd.f32 1.0, %v2041_v15  ;;  %2060 = vpow2.f32 %v1795_v7  ;;  %v622_v23 = vpop.f32.mrb[20].mxu0  ;;  %1339 = vmatprep.mubr.f32.mxu0 %v1142_v50  ;;  %v2043_v24 = vpop.eup %2042  ;;  %v1797_v25 = vmul.f32 -1.442695, %v2777_v14 }
 0x15e   : > { %2062 = vrcp.f32 %v956_v17  ;;  %v2783_v58 = vadd.f32 %v622_v23, %v2692_v42  ;;  %v624_v26 = vpop.f32.mrb[21].mxu0  ;;  %1340 = vmatmul.mubr.f32.gmra.mrb[68].mxu0 %v1141_v16  ;;  %v2045_v27 = vpop.eup %2044  ;;  %v958_v56 = vadd.f32 1.0, %v2043_v24 }
 0x15f   : > { %2064 = vrcp.f32 %v957_v21  ;;  %v2786_v28 = vadd.f32 %v624_v26, %v2694_v43  ;;  %v1143_v38 = vmul.f32 %v2045_v27, %v2721_v62 }
 0x160   : > { %v2047_v30 = vpop.eup %2046  ;;  %2066 = vpow2.f32 %v1796_v19  ;;  %v1798_v32 = vmul.f32 -1.442695, %v2783_v58 }
 0x161   : > { %v2049_v33 = vpop.eup %2048  ;;  %v1144_v34 = vmul.f32 %v2047_v30, %v2724_v0  ;;  %2068 = vrcp.f32 %v958_v56  ;;  %v1799_v35 = vmul.f32 -1.442695, %v2786_v28  ;;  %v628_v36 = vpop.f32.mrb[22].mxu0 }
 0x162   : > { %v2051_v37 = vpop.eup %2050  ;;  %2070 = vpow2.f32 %v1797_v25  ;;  %v2793_v39 = vadd.f32 %v628_v36, %v2692_v42  ;;  %v630_v41 = vpop.f32.mrb[23].mxu0  ;;  %v1145_v59 = vmul.f32 %v2049_v33, %v2729_v8 }
 0x163   : > { %v2053_v44 = vpop.eup %2052  ;;  %v959_v47 = vadd.f32 1.0, %v2051_v37  ;;  %2072 = vpow2.f32 %v1798_v32  ;;  %1344 = vmatprep.mubr.f32.mxu0 %v1144_v34  ;;  %v2796_v48 = vadd.f32 %v630_v41, %v2694_v43 }
 0x164   : > { %v2055_v0 = vpop.eup %2054  ;;  %v960_v49 = vadd.f32 1.0, %v2053_v44  ;;  %2074 = vpow2.f32 %v1799_v35  ;;  %v1800_v51 = vmul.f32 -1.442695, %v2793_v39  ;;  %1345 = vmatmul.mubr.f32.gmra.mrb[70].mxu0 %v1143_v38 }
 0x165   : > { %v2057_v53 = vpop.eup %2056  ;;  %2076 = vrcp.f32 %v959_v47  ;;  %v1801_v62 = vmul.f32 -1.442695, %v2796_v48  ;;  %v634_v54 = vpop.f32.mrb[24].mxu0  ;;  %v1146_v55 = vmul.f32 %v2055_v0, %v2732_v10 }
 0x166   : > { %v2059_v57 = vpop.eup %2058  ;;  %2078 = vrcp.f32 %v960_v49  ;;  %v2803_v60 = vadd.f32 %v634_v54, %v2692_v42  ;;  %v636_v61 = vpop.f32.mrb[25].mxu0  ;;  %v1147_v11 = vmul.f32 %v2057_v53, %v2737_v18 }
 0x167   : > { %v2061_v40 = vpop.eup %2060  ;;  %v961_v1 = vadd.f32 1.0, %v2059_v57  ;;  %2080 = vpow2.f32 %v1800_v51  ;;  %1349 = vmatprep.mubr.f32.mxu1 %v1146_v55  ;;  %v2806_v2 = vadd.f32 %v636_v61, %v2694_v43 }
 0x168   : > { %v2063_v3 = vpop.eup %2062  ;;  %v962_v4 = vadd.f32 1.0, %v2061_v40  ;;  %2082 = vpow2.f32 %v1801_v62  ;;  %v1802_v10 = vmul.f32 -1.442695, %v2803_v60  ;;  %1350 = vmatmul.mubr.f32.vlgmr.msra.gmra.mrb[0].mxu1 %v1145_v59 }
 0x169   : > { %v2065_v5 = vpop.eup %2064  ;;  %v1148_v8 = vmul.f32 %v2063_v3, %v2740_v20  ;;  %2084 = vrcp.f32 %v961_v1  ;;  %v1803_v6 = vmul.f32 -1.442695, %v2806_v2  ;;  %v640_v7 = vpop.f32.mrb[26].mxu0 }
 0x16a   : > { %v2067_v9 = vpop.eup %2066  ;;  %2086 = vrcp.f32 %v962_v4  ;;  %v2813_v12 = vadd.f32 %v640_v7, %v2692_v42  ;;  %v642_v13 = vpop.f32.mrb[27].mxu0  ;;  %v1149_v21 = vmul.f32 %v2065_v5, %v2745_v29 }
 0x16b   : > { %v2069_v50 = vpop.eup %2068  ;;  %v963_v15 = vadd.f32 1.0, %v2067_v9  ;;  %2088 = vpow2.f32 %v1802_v10  ;;  %1354 = vmatprep.mubr.f32.mxu1 %v1148_v8  ;;  %v2816_v16 = vadd.f32 %v642_v13, %v2694_v43 }
 0x16c   : > { %v2071_v20 = vpop.eup %2070  ;;  %v1150_v17 = vmul.f32 %v2069_v50, %v2748_v31  ;;  %2090 = vpow2.f32 %v1803_v6  ;;  %v1804_v19 = vmul.f32 -1.442695, %v2813_v12  ;;  %1355 = vmatmul.mubr.f32.gmra.mrb[2].mxu1 %v1147_v11 }
 0x16d   : > { %v2073_v18 = vpop.eup %2072  ;;  %2092 = vrcp.f32 %v963_v15  ;;  %v964_v23 = vadd.f32 1.0, %v2071_v20  ;;  %v646_v24 = vpop.f32.mrb[28].mxu0  ;;  %v1805_v27 = vmul.f32 -1.442695, %v2816_v16 }
 0x16e   : > { %v2075_v25 = vpop.eup %2074  ;;  %v965_v26 = vadd.f32 1.0, %v2073_v18  ;;  %2094 = vpow2.f32 %v1804_v19  ;;  %v2823_v56 = vadd.f32 %v646_v24, %v2692_v42  ;;  %1359 = vmatprep.mubr.f32.mxu1 %v1150_v17  ;;  %v648_v31 = vpop.f32.mrb[29].mxu0 }
 0x16f   : > { %v2077_v30 = vpop.eup %2076  ;;  %2096 = vrcp.f32 %v964_v23  ;;  %v966_v32 = vadd.f32 1.0, %v2075_v25  ;;  %v2826_v33 = vadd.f32 %v648_v31, %v2694_v43 }
 0x170   : > { %v2079_v29 = vpop.eup %2078  ;;  %2098 = vrcp.f32 %v965_v26  ;;  %v1806_v34 = vmul.f32 -1.442695, %v2823_v56  ;;  %1360 = vmatmul.mubr.f32.gmra.mrb[4].mxu1 %v1149_v21  ;;  %v1151_v36 = vmul.f32 %v2077_v30, %v2753_v22 }
 0x171   : > { %v2081_v35 = vpop.eup %2080  ;;  %v1152_v37 = vmul.f32 %v2079_v29, %v2757_v45  ;;  %2100 = vrcp.f32 %v966_v32  ;;  %v652_v38 = vpop.f32.mrb[30].mxu0  ;;  %v1807_v47 = vmul.f32 -1.442695, %v2826_v33 }
 0x172   : > { %v2083_v41 = vpop.eup %2082  ;;  %v967_v44 = vadd.f32 1.0, %v2081_v35  ;;  %2102 = vpow2.f32 %v1805_v27  ;;  %v2833_v0 = vadd.f32 %v652_v38, %v2692_v42  ;;  %v654_v49 = vpop.f32.mrb[31].mxu0 }
 0x173   : > { %v2085_v51 = vpop.eup %2084  ;;  %v968_v53 = vadd.f32 1.0, %v2083_v41  ;;  %2104 = vpow2.f32 %v1806_v34  ;;  %1364 = vmatprep.mubr.f32.mxu1 %v1152_v37  ;;  %v2836_v62 = vadd.f32 %v654_v49, %v2694_v43 }
 0x174   : > { %v2087_v22 = vpop.eup %2086  ;;  %2106 = vrcp.f32 %v967_v44  ;;  %v1808_v45 = vmul.f32 -1.442695, %v2833_v0  ;;  %1365 = vmatmul.mubr.f32.gmra.mrb[6].mxu1 %v1151_v36  ;;  %v1153_v55 = vmul.f32 %v2085_v51, %v2763_v46 }
 0x175   : > { %v2089_v54 = vpop.eup %2088  ;;  %v1154_v57 = vmul.f32 %v2087_v22, %v2767_v63  ;;  %2108 = vrcp.f32 %v968_v53  ;;  %v658_v59 = vpop.f32.mrb[32].mxu0  ;;  %v1809_v1 = vmul.f32 -1.442695, %v2836_v62 }
 0x176   : > { %v2091_v61 = vpop.eup %2090  ;;  %v969_v40 = vadd.f32 1.0, %v2089_v54  ;;  %2110 = vpow2.f32 %v1807_v47  ;;  %v2843_v3 = vadd.f32 %v658_v59, %v2692_v42  ;;  %v660_v4 = vpop.f32.mrb[33].mxu0 }
 0x177   : > { %v2093_v10 = vpop.eup %2092  ;;  %v970_v5 = vadd.f32 1.0, %v2091_v61  ;;  %2112 = vpow2.f32 %v1808_v45  ;;  %1369 = vmatprep.mubr.f32.mxu1 %v1154_v57  ;;  %v2846_v8 = vadd.f32 %v660_v4, %v2694_v43 }
 0x178   : > { %v2095_v46 = vpop.eup %2094  ;;  %2114 = vrcp.f32 %v969_v40  ;;  %v1810_v63 = vmul.f32 -1.442695, %v2843_v3  ;;  %1370 = vmatmul.mubr.f32.gmra.mrb[8].mxu1 %v1153_v55  ;;  %v1155_v19 = vmul.f32 %v2093_v10, %v2773_v52 }
 0x179   : > { %v2097_v6 = vpop.eup %2096  ;;  %2116 = vrcp.f32 %v970_v5  ;;  %v971_v7 = vadd.f32 1.0, %v2095_v46  ;;  %v1811_v9 = vmul.f32 -1.442695, %v2846_v8  ;;  %v664_v11 = vpop.f32.mrb[34].mxu0 }
 0x17a   : > { %v2099_v13 = vpop.eup %2098  ;;  %v1156_v50 = vmul.f32 %v2097_v6, %v2777_v14  ;;  %2118 = vpow2.f32 %v1809_v1  ;;  %v2852_v15 = vadd.f32 %v664_v11, %v2692_v42  ;;  %v666_v20 = vpop.f32.mrb[35].mxu0 }
 0x17b   : > { %v2101_v17 = vpop.eup %2100  ;;  %2120 = vrcp.f32 %v971_v7  ;;  %v2856_v18 = vadd.f32 %v666_v20, %v2694_v43  ;;  %v1157_v29 = vmul.f32 %v2099_v13, %v2783_v58 }
 0x17c   : > { %v2103_v21 = vpop.eup %2102  ;;  %v1158_v23 = vmul.f32 %v2101_v17, %v2786_v28  ;;  %2122 = vpow2.f32 %v1810_v63  ;;  %v1812_v24 = vmul.f32 -1.442695, %v2852_v15  ;;  %1374 = vmatprep.mubr.f32.mxu1 %v1156_v50 }
 0x17d   : > { %v2105_v14 = vpop.eup %2104  ;;  %v972_v25 = vadd.f32 1.0, %v2103_v21  ;;  %2124 = vpow2.f32 %v1811_v9  ;;  %v1813_v26 = vmul.f32 -1.442695, %v2856_v18  ;;  %1375 = vmatmul.mubr.f32.gmra.mrb[10].mxu1 %v1155_v19  ;;  %v670_v27 = vpop.f32.mrb[36].mxu0 }
 0x17e   : > { %v2107_v31 = vpop.eup %2106  ;;  %v973_v52 = vadd.f32 1.0, %v2105_v14  ;;  %2126 = vpow2.f32 %v1812_v24  ;;  %v2862_v30 = vadd.f32 %v670_v27, %v2692_v42  ;;  %1379 = vmatprep.mubr.f32.mxu1 %v1158_v23  ;;  %v672_v32 = vpop.f32.mrb[37].mxu0 }
 0x17f   : > { %v2109_v28 = vpop.eup %2108  ;;  %2128 = vrcp.f32 %v972_v25  ;;  %v2866_v34 = vadd.f32 %v672_v32, %v2694_v43 }
 0x180   : > { %v2111_v35 = vpop.eup %2110  ;;  %v1160_v36 = vmul.f32 %v2109_v28, %v2796_v48  ;;  %2130 = vrcp.f32 %v973_v52  ;;  %v1814_v37 = vmul.f32 -1.442695, %v2862_v30  ;;  %v1159_v48 = vmul.f32 %v2107_v31, %v2793_v39 }
 0x181   : > { %v2113_v38 = vpop.eup %2112  ;;  %v974_v41 = vadd.f32 1.0, %v2111_v35  ;;  %2132 = vpow2.f32 %v1813_v26  ;;  %v1815_v44 = vmul.f32 -1.442695, %v2866_v34  ;;  %1380 = vmatmul.mubr.f32.gmra.mrb[12].mxu1 %v1157_v29  ;;  %v676_v47 = vpop.f32.mrb[38].mxu0 }
 0x182   : > { %v2115_v49 = vpop.eup %2114  ;;  %v975_v51 = vadd.f32 1.0, %v2113_v38  ;;  %2134 = vpow2.f32 %v1814_v37  ;;  %v2872_v58 = vadd.f32 %v676_v47, %v2692_v42  ;;  %1384 = vmatprep.mubr.f32.mxu1 %v1160_v36  ;;  %v678_v53 = vpop.f32.mrb[39].mxu0 }
 0x183   : > { %v2117_v22 = vpop.eup %2116  ;;  %2136 = vrcp.f32 %v974_v41  ;;  %v2876_v45 = vadd.f32 %v678_v53, %v2694_v43 }
 0x184   : > { %v2119_v54 = vpop.eup %2118  ;;  %v1162_v55 = vmul.f32 %v2117_v22, %v2806_v2  ;;  %2138 = vrcp.f32 %v975_v51  ;;  %v1816_v57 = vmul.f32 -1.442695, %v2872_v58  ;;  %v1161_v2 = vmul.f32 %v2115_v49, %v2803_v60 }
 0x185   : > { %v2121_v59 = vpop.eup %2120  ;;  %v976_v61 = vadd.f32 1.0, %v2119_v54  ;;  %2140 = vpow2.f32 %v1815_v44  ;;  %v1817_v40 = vmul.f32 -1.442695, %v2876_v45  ;;  %1385 = vmatmul.mubr.f32.gmra.mrb[14].mxu1 %v1159_v48  ;;  %v682_v1 = vpop.f32.mrb[40].mxu0 }
 0x186   : > { %v2123_v4 = vpop.eup %2122  ;;  %2142 = vpow2.f32 %v1816_v57  ;;  %v2882_v39 = vadd.f32 %v682_v1, %v2692_v42  ;;  %1389 = vmatprep.mubr.f32.mxu1 %v1162_v55  ;;  %v684_v10 = vpop.f32.mrb[41].mxu0  ;;  %v1163_v24 = vmul.f32 %v2121_v59, %v2813_v12 }
 0x187   : > { %v2125_v5 = vpop.eup %2124  ;;  %2144 = vrcp.f32 %v976_v61  ;;  %v977_v46 = vadd.f32 1.0, %v2123_v4  ;;  %v2886_v63 = vadd.f32 %v684_v10, %v2694_v43 }
 0x188   : > { %v2127_v6 = vpop.eup %2126  ;;  %v978_v7 = vadd.f32 1.0, %v2125_v5  ;;  %2146 = vpow2.f32 %v1817_v40  ;;  %v1818_v9 = vmul.f32 -1.442695, %v2882_v39 }
 0x189   : > { %v2129_v11 = vpop.eup %2128  ;;  %2148 = vrcp.f32 %v977_v46  ;;  %v979_v13 = vadd.f32 1.0, %v2127_v6  ;;  %v1819_v50 = vmul.f32 -1.442695, %v2886_v63  ;;  %1390 = vmatmul.mubr.f32.gmra.mrb[16].mxu1 %v1161_v2  ;;  %v688_v20 = vpop.f32.mrb[42].mxu0 }
 0x18a   : > { %v2131_v17 = vpop.eup %2130  ;;  %v1164_v60 = vmul.f32 %v2129_v11, %v2816_v16  ;;  %2150 = vrcp.f32 %v978_v7  ;;  %v2892_v19 = vadd.f32 %v688_v20, %v2692_v42  ;;  %v690_v21 = vpop.f32.mrb[43].mxu0 }
 0x18b   : > { %v2133_v23 = vpop.eup %2132  ;;  %2152 = vrcp.f32 %v979_v13  ;;  %v2896_v14 = vadd.f32 %v690_v21, %v2694_v43  ;;  %v1165_v37 = vmul.f32 %v2131_v17, %v2823_v56 }
 0x18c   : > { %v2135_v25 = vpop.eup %2134  ;;  %v980_v26 = vadd.f32 1.0, %v2133_v23  ;;  %2154 = vpow2.f32 %v1818_v9  ;;  %v1820_v27 = vmul.f32 -1.442695, %v2892_v19  ;;  %1394 = vmatprep.mubr.f32.mxu1 %v1164_v60 }
 0x18d   : > { %v2137_v31 = vpop.eup %2136  ;;  %v981_v16 = vadd.f32 1.0, %v2135_v25  ;;  %2156 = vpow2.f32 %v1819_v50  ;;  %v1821_v52 = vmul.f32 -1.442695, %v2896_v14  ;;  %1395 = vmatmul.mubr.f32.gmra.mrb[18].mxu1 %v1163_v24  ;;  %v694_v32 = vpop.f32.mrb[44].mxu0 }
 0x18e   : > { %v2139_v28 = vpop.eup %2138  ;;  %v1166_v12 = vmul.f32 %v2137_v31, %v2826_v33  ;;  %2158 = vrcp.f32 %v980_v26  ;;  %v2902_v29 = vadd.f32 %v694_v32, %v2692_v42  ;;  %v696_v35 = vpop.f32.mrb[45].mxu0 }
 0x18f   : > { %v2141_v36 = vpop.eup %2140  ;;  %2160 = vrcp.f32 %v981_v16  ;;  %v2906_v38 = vadd.f32 %v696_v35, %v2694_v43  ;;  %v1167_v57 = vmul.f32 %v2139_v28, %v2833_v0 }
 0x190   : > { %v2143_v41 = vpop.eup %2142  ;;  %v982_v44 = vadd.f32 1.0, %v2141_v36  ;;  %2162 = vpow2.f32 %v1820_v27  ;;  %v1822_v47 = vmul.f32 -1.442695, %v2902_v29  ;;  %1399 = vmatprep.mubr.f32.mxu1 %v1166_v12 }
 0x191   : > { %v2145_v49 = vpop.eup %2144  ;;  %v983_v33 = vadd.f32 1.0, %v2143_v41  ;;  %2164 = vpow2.f32 %v1821_v52  ;;  %1400 = vmatmul.mubr.f32.gmra.mrb[20].mxu1 %v1165_v37  ;;  %v700_v51 = vpop.f32.mrb[46].mxu0  ;;  %v1823_v56 = vmul.f32 -1.442695, %v2906_v38 }
 0x192   : > { %v2147_v53 = vpop.eup %2146  ;;  %v1168_v22 = vmul.f32 %v2145_v49, %v2836_v62  ;;  %2166 = vrcp.f32 %v982_v44  ;;  %v2912_v48 = vadd.f32 %v700_v51, %v2692_v42  ;;  %v702_v54 = vpop.f32.mrb[47].mxu0 }
 0x193   : > { %v2149_v55 = vpop.eup %2148  ;;  %2168 = vrcp.f32 %v983_v33  ;;  %v984_v59 = vadd.f32 1.0, %v2147_v53  ;;  %v2916_v61 = vadd.f32 %v702_v54, %v2694_v43 }
 0x194   : > { %v2151_v40 = vpop.eup %2150  ;;  %2170 = vpow2.f32 %v1822_v47  ;;  %v1824_v1 = vmul.f32 -1.442695, %v2912_v48  ;;  %1404 = vmatprep.mubr.f32.mxu1 %v1168_v22  ;;  %v1169_v7 = vmul.f32 %v2149_v55, %v2843_v3 }
 0x195   : > { %v2153_v62 = vpop.eup %2152  ;;  %v1170_v4 = vmul.f32 %v2151_v40, %v2846_v8  ;;  %2172 = vrcp.f32 %v984_v59  ;;  %v1825_v10 = vmul.f32 -1.442695, %v2916_v61  ;;  %1405 = vmatmul.mubr.f32.gmra.mrb[22].mxu1 %v1167_v57  ;;  %v706_v5 = vpop.f32.mrb[48].mxu0 }
 0x196   : > { %v2155_v2 = vpop.eup %2154  ;;  %2174 = vpow2.f32 %v1823_v56  ;;  %v2922_v0 = vadd.f32 %v706_v5, %v2692_v42  ;;  %v708_v46 = vpop.f32.mrb[49].mxu0  ;;  %v1171_v26 = vmul.f32 %v2153_v62, %v2852_v15 }
 0x197   : > { %v2157_v6 = vpop.eup %2156  ;;  %v985_v9 = vadd.f32 1.0, %v2155_v2  ;;  %2176 = vpow2.f32 %v1824_v1  ;;  %1409 = vmatprep.mubr.f32.mxu1 %v1170_v4  ;;  %v2926_v11 = vadd.f32 %v708_v46, %v2694_v43 }
 0x198   : > { %v2159_v8 = vpop.eup %2158  ;;  %v986_v13 = vadd.f32 1.0, %v2157_v6  ;;  %2178 = vpow2.f32 %v1825_v10  ;;  %v1826_v50 = vmul.f32 -1.442695, %v2922_v0 }
 0x199   : > { %v2161_v20 = vpop.eup %2160  ;;  %v1172_v17 = vmul.f32 %v2159_v8, %v2856_v18  ;;  %2180 = vrcp.f32 %v985_v9  ;;  %v1827_v60 = vmul.f32 -1.442695, %v2926_v11  ;;  %1410 = vmatmul.mubr.f32.gmra.mrb[24].mxu1 %v1169_v7  ;;  %v712_v21 = vpop.f32.mrb[50].mxu0 }
 0x19a   : > { %v2163_v3 = vpop.eup %2162  ;;  %2182 = vrcp.f32 %v986_v13  ;;  %v2932_v23 = vadd.f32 %v712_v21, %v2692_v42  ;;  %v714_v24 = vpop.f32.mrb[51].mxu0  ;;  %v1173_v44 = vmul.f32 %v2161_v20, %v2862_v30 }
 0x19b   : > { %v2165_v25 = vpop.eup %2164  ;;  %v987_v27 = vadd.f32 1.0, %v2163_v3  ;;  %2184 = vpow2.f32 %v1826_v50  ;;  %1414 = vmatprep.mubr.f32.mxu1 %v1172_v17  ;;  %v2936_v31 = vadd.f32 %v714_v24, %v2694_v43 }
 0x19c   : > { %v2167_v18 = vpop.eup %2166  ;;  %v988_v16 = vadd.f32 1.0, %v2165_v25  ;;  %2186 = vpow2.f32 %v1827_v60  ;;  %v1828_v52 = vmul.f32 -1.442695, %v2932_v23 }
 0x19d   : > { %v2169_v32 = vpop.eup %2168  ;;  %v1174_v28 = vmul.f32 %v2167_v18, %v2866_v34  ;;  %2188 = vrcp.f32 %v987_v27  ;;  %v1829_v12 = vmul.f32 -1.442695, %v2936_v31  ;;  %1415 = vmatmul.mubr.f32.gmra.mrb[26].mxu1 %v1171_v26  ;;  %v718_v35 = vpop.f32.mrb[52].mxu0 }
 0x19e   : > { %v2171_v15 = vpop.eup %2170  ;;  %2190 = vrcp.f32 %v988_v16  ;;  %v2942_v36 = vadd.f32 %v718_v35, %v2692_v42  ;;  %v720_v37 = vpop.f32.mrb[53].mxu0 }
 0x19f   : > { %v2173_v41 = vpop.eup %2172  ;;  %v989_v47 = vadd.f32 1.0, %v2171_v15  ;;  %2192 = vpow2.f32 %v1828_v52  ;;  %1419 = vmatprep.mubr.f32.mxu1 %v1174_v28  ;;  %v2946_v49 = vadd.f32 %v720_v37, %v2694_v43 }
 0x1a0   : > { %v2175_v34 = vpop.eup %2174  ;;  %v1176_v33 = vmul.f32 %v2173_v41, %v2876_v45  ;;  %2194 = vpow2.f32 %v1829_v12  ;;  %v1830_v51 = vmul.f32 -1.442695, %v2942_v36  ;;  %v1175_v45 = vmul.f32 %v2169_v32, %v2872_v58 }
 0x1a1   : > { %v2177_v53 = vpop.eup %2176  ;;  %2196 = vrcp.f32 %v989_v47  ;;  %v990_v22 = vadd.f32 1.0, %v2175_v34  ;;  %1420 = vmatmul.mubr.f32.gmra.mrb[28].mxu1 %v1173_v44  ;;  %v724_v56 = vpop.f32.mrb[54].mxu0  ;;  %v1831_v30 = vmul.f32 -1.442695, %v2946_v49 }
 0x1a2   : > { %v2179_v54 = vpop.eup %2178  ;;  %v991_v55 = vadd.f32 1.0, %v2177_v53  ;;  %2198 = vpow2.f32 %v1830_v51  ;;  %v2952_v57 = vadd.f32 %v724_v56, %v2692_v42  ;;  %1424 = vmatprep.mubr.f32.mxu1 %v1176_v33  ;;  %v726_v59 = vpop.f32.mrb[55].mxu0 }
 0x1a3   : > { %v2181_v40 = vpop.eup %2180  ;;  %2200 = vrcp.f32 %v990_v22  ;;  %v992_v1 = vadd.f32 1.0, %v2179_v54  ;;  %v2956_v62 = vadd.f32 %v726_v59, %v2694_v43 }
 0x1a4   : > { %v2183_v4 = vpop.eup %2182  ;;  %2202 = vrcp.f32 %v991_v55  ;;  %v1832_v10 = vmul.f32 -1.442695, %v2952_v57  ;;  %v1177_v50 = vmul.f32 %v2181_v40, %v2882_v39 }
 0x1a5   : > { %v2185_v5 = vpop.eup %2184  ;;  %v1178_v2 = vmul.f32 %v2183_v4, %v2886_v63  ;;  %2204 = vrcp.f32 %v992_v1  ;;  %1425 = vmatmul.mubr.f32.gmra.mrb[30].mxu1 %v1175_v45  ;;  %v730_v46 = vpop.f32.mrb[56].mxu0  ;;  %v1833_v58 = vmul.f32 -1.442695, %v2956_v62 }
 0x1a6   : > { %v2187_v6 = vpop.eup %2186  ;;  %v993_v7 = vadd.f32 1.0, %v2185_v5  ;;  %2206 = vpow2.f32 %v1831_v30  ;;  %v2962_v9 = vadd.f32 %v730_v46, %v2692_v42  ;;  %v732_v8 = vpop.f32.mrb[57].mxu0 }
 0x1a7   : > { %v2189_v13 = vpop.eup %2188  ;;  %v994_v20 = vadd.f32 1.0, %v2187_v6  ;;  %2208 = vpow2.f32 %v1832_v10  ;;  %1429 = vmatprep.mubr.f32.mxu1 %v1178_v2  ;;  %v2966_v63 = vadd.f32 %v732_v8, %v2694_v43 }
 0x1a8   : > { %v2191_v17 = vpop.eup %2190  ;;  %2210 = vrcp.f32 %v993_v7  ;;  %v1834_v60 = vmul.f32 -1.442695, %v2962_v9  ;;  %v1179_v52 = vmul.f32 %v2189_v13, %v2892_v19 }
 0x1a9   : > { %v2193_v21 = vpop.eup %2192  ;;  %v1180_v3 = vmul.f32 %v2191_v17, %v2896_v14  ;;  %2212 = vrcp.f32 %v994_v20  ;;  %1430 = vmatmul.mubr.f32.gmra.mrb[32].mxu1 %v1177_v50  ;;  %v736_v24 = vpop.f32.mrb[58].mxu0  ;;  %v1835_v39 = vmul.f32 -1.442695, %v2966_v63 }
 0x1aa   : > { %v2195_v25 = vpop.eup %2194  ;;  %v995_v26 = vadd.f32 1.0, %v2193_v21  ;;  %2214 = vpow2.f32 %v1833_v58  ;;  %v2972_v27 = vadd.f32 %v736_v24, %v2692_v42  ;;  %v738_v18 = vpop.f32.mrb[59].mxu0 }
 0x1ab   : > { %v2197_v16 = vpop.eup %2196  ;;  %v996_v32 = vadd.f32 1.0, %v2195_v25  ;;  %2216 = vpow2.f32 %v1834_v60  ;;  %1434 = vmatprep.mubr.f32.mxu1 %v1180_v3  ;;  %v2976_v14 = vadd.f32 %v738_v18, %v2694_v43 }
 0x1ac   : > { %v2199_v28 = vpop.eup %2198  ;;  %2218 = vrcp.f32 %v995_v26  ;;  %v1836_v12 = vmul.f32 -1.442695, %v2972_v27  ;;  %v1181_v51 = vmul.f32 %v2197_v16, %v2902_v29 }
 0x1ad   : > { %v2201_v35 = vpop.eup %2200  ;;  %2220 = vrcp.f32 %v996_v32  ;;  %v997_v15 = vadd.f32 1.0, %v2199_v28  ;;  %v1837_v37 = vmul.f32 -1.442695, %v2976_v14  ;;  %1435 = vmatmul.mubr.f32.gmra.mrb[34].mxu1 %v1179_v52  ;;  %v742_v41 = vpop.f32.mrb[60].mxu0 }
 0x1ae   : > { %v2203_v44 = vpop.eup %2202  ;;  %v1182_v19 = vmul.f32 %v2201_v35, %v2906_v38  ;;  %2222 = vpow2.f32 %v1835_v39  ;;  %v2982_v47 = vadd.f32 %v742_v41, %v2692_v42  ;;  %v744_v34 = vpop.f32.mrb[61].mxu0 }
 0x1af   : > { %v2205_v33 = vpop.eup %2204  ;;  %2224 = vrcp.f32 %v997_v15  ;;  %v2986_v53 = vadd.f32 %v744_v34, %v2694_v43  ;;  %v1183_v4 = vmul.f32 %v2203_v44, %v2912_v48 }
 0x1b0   : > { %v2207_v22 = vpop.eup %2206  ;;  %v1184_v56 = vmul.f32 %v2205_v33, %v2916_v61  ;;  %2226 = vpow2.f32 %v1836_v12  ;;  %v1838_v54 = vmul.f32 -1.442695, %v2982_v47  ;;  %1439 = vmatprep.mubr.f32.mxu1 %v1182_v19 }
 0x1b1   : > { %v2209_v38 = vpop.eup %2208  ;;  %v998_v55 = vadd.f32 1.0, %v2207_v22  ;;  %2228 = vpow2.f32 %v1837_v37  ;;  %v1839_v30 = vmul.f32 -1.442695, %v2986_v53  ;;  %1440 = vmatmul.mubr.f32.gmra.mrb[36].mxu1 %v1181_v51  ;;  %v748_v59 = vpop.f32.mrb[62].mxu0 }
 0x1b2   : > { %v2211_v40 = vpop.eup %2210  ;;  %v999_v29 = vadd.f32 1.0, %v2209_v38  ;;  %2230 = vpow2.f32 %v1838_v54  ;;  %v2992_v45 = vadd.f32 %v748_v59, %v2692_v42  ;;  %1444 = vmatprep.mubr.f32.mxu1 %v1184_v56  ;;  %v750_v1 = vpop.f32.mrb[63].mxu0  ;;  %v1202_v59 = vld [vmem:[#allocation2 + $0x8] sm:$0xff] }
 0x1b3   : > { %v2213_v61 = vpop.eup %2212  ;;  %2232 = vrcp.f32 %v998_v55  ;;  %v2996_v10 = vadd.f32 %v750_v1, %v2694_v43  ;;  %v1185_v43 = vmul.f32 %v2211_v40, %v2922_v0  ;;  %v1203_v1 = vld [vmem:[#allocation2 + $0x10] sm:$0xff] }
 0x1b4   : > { %v2215_v5 = vpop.eup %2214  ;;  %v1186_v2 = vmul.f32 %v2213_v61, %v2926_v11  ;;  %2234 = vrcp.f32 %v999_v29  ;;  %v1840_v46 = vmul.f32 -1.442695, %v2992_v45 }
 0x1b5   : > { %v2217_v6 = vpop.eup %2216  ;;  %v1000_v7 = vadd.f32 1.0, %v2215_v5  ;;  %2236 = vpow2.f32 %v1839_v30  ;;  %v1841_v42 = vmul.f32 -1.442695, %v2996_v10  ;;  %1445 = vmatmul.mubr.f32.gmra.mrb[38].mxu1 %v1183_v4 }
 0x1b6   : > { %v2219_v58 = vpop.eup %2218  ;;  %v1001_v8 = vadd.f32 1.0, %v2217_v6  ;;  %2238 = vpow2.f32 %v1840_v46  ;;  %1449 = vmatprep.mubr.f32.mxu1 %v1186_v2  ;;  %v1205_v46 = vld [vmem:[#allocation2 + $0x20] sm:$0xff] }
 0x1b7   : > { %v2221_v48 = vpop.eup %2220  ;;  %2240 = vrcp.f32 %v1000_v7  ;;  %v1187_v21 = vmul.f32 %v2219_v58, %v2932_v23  ;;  %v1206_v58 = vld [vmem:[#allocation2 + $0x28] sm:$0xff] }
 0x1b8   : > { %v2223_v13 = vpop.eup %2222  ;;  %v1188_v11 = vmul.f32 %v2221_v48, %v2936_v31  ;;  %2242 = vpow2.f32 %v1841_v42 }
 0x1b9   : > { %v2225_v50 = vpop.eup %2224  ;;  %v1002_v20 = vadd.f32 1.0, %v2223_v13  ;;  %1450 = vmatmul.mubr.f32.gmra.mrb[40].mxu1 %v1185_v43  ;;  %2244 = vrcp.f32 %v1001_v8  ;;  %v1207_v13 = vld [vmem:[#allocation2 + $0x30] sm:$0xff] }
 0x1ba   : > { %v2227_v17 = vpop.eup %2226  ;;  %1454 = vmatprep.mubr.f32.mxu1 %v1188_v11  ;;  %v1189_v16 = vmul.f32 %v2225_v50, %v2942_v36 }
 0x1bb   : > { %v2229_v60 = vpop.eup %2228  ;;  %2246 = vrcp.f32 %v1002_v20  ;;  %v1003_v3 = vadd.f32 1.0, %v2227_v17  ;;  %v1208_v17 = vld [vmem:[#allocation2 + $0x38] sm:$0xff] }
 0x1bc   : > { %v2231_v24 = vpop.eup %2230  ;;  %v1004_v25 = vadd.f32 1.0, %v2229_v60 }
 0x1bd   : > { %v2233_v26 = vpop.eup %2232  ;;  %2248 = vrcp.f32 %v1003_v3  ;;  %v1005_v0 = vadd.f32 1.0, %v2231_v24  ;;  %1455 = vmatmul.mubr.f32.gmra.mrb[42].mxu1 %v1187_v21  ;;  %v1209_v24 = vld [vmem:[#allocation2 + $0x40] sm:$0xff] }
 0x1be   : > { %v2235_v39 = vpop.eup %2234  ;;  %v1190_v31 = vmul.f32 %v2233_v26, %v2946_v49  ;;  %2250 = vrcp.f32 %v1004_v25 }
 0x1bf   : > { %v2237_v18 = vpop.eup %2236  ;;  %2252 = vrcp.f32 %v1005_v0  ;;  %v1191_v15 = vmul.f32 %v2235_v39, %v2952_v57  ;;  %v1210_v39 = vld [vmem:[#allocation2 + $0x48] sm:$0xff] }
 0x1c0   : > { %v2239_v52 = vpop.eup %2238  ;;  %v1006_v32 = vadd.f32 1.0, %v2237_v18  ;;  %1459 = vmatprep.mubr.f32.mxu1 %v1190_v31 }
 0x1c1   : > { %v2241_v28 = vpop.eup %2240  ;;  %v1007_v23 = vadd.f32 1.0, %v2239_v52  ;;  %1460 = vmatmul.mubr.f32.gmra.mrb[44].mxu1 %v1189_v16  ;;  %v1211_v52 = vld [vmem:[#allocation2 + $0x50] sm:$0xff] }
 0x1c2   : > { %v1192_v12 = vmul.f32 %v2241_v28, %v2956_v62  ;;  %2254 = vrcp.f32 %v1006_v32  ;;  %v2243_v35 = vpop.eup %2242 }
 0x1c3   : > { %v2245_v37 = vpop.eup %2244  ;;  %v1008_v41 = vadd.f32 1.0, %v2243_v35  ;;  %2256 = vrcp.f32 %v1007_v23 }
 0x1c4   : > { %1464 = vmatprep.mubr.f32.mxu1 %v1192_v12  ;;  %v1193_v19 = vmul.f32 %v2245_v37, %v2962_v9  ;;  %v1212_v12 = vld [vmem:[#allocation2 + $0x58] sm:$0xff] }
 0x1c5   : > { %v2247_v49 = vpop.eup %2246  ;;  %1465 = vmatmul.mubr.f32.gmra.mrb[46].mxu1 %v1191_v15  ;;  %2258 = vrcp.f32 %v1008_v41  ;;  %v1213_v41 = vld [vmem:[#allocation2 + $0x60] sm:$0xff] }
 0x1c6   : > { %v1194_v36 = vmul.f32 %v2247_v49, %v2966_v63 }
 0x1c7   : > { %v2249_v44 = vpop.eup %2248 }
 0x1c8   : > { %v2251_v34 = vpop.eup %2250  ;;  %1469 = vmatprep.mubr.f32.mxu1 %v1194_v36  ;;  %v1195_v57 = vmul.f32 %v2249_v44, %v2972_v27 }
 0x1c9   : > { %v1196_v62 = vmul.f32 %v2251_v34, %v2976_v14  ;;  %1470 = vmatmul.mubr.f32.gmra.mrb[48].mxu1 %v1193_v19  ;;  %v2253_v33 = vpop.eup %2252  ;;  %v1201_v14 = vld [vmem:[#allocation2] sm:$0xff]  ;;  %v1214_v19 = vld [vmem:[#allocation2 + $0x68] sm:$0xff] }
 0x1ca   : > { %v1197_v63 = vmul.f32 %v2253_v33, %v2982_v47 }
 0x1cb   : > { %1474 = vmatprep.mubr.f32.mxu1 %v1196_v62 }
 0x1cc   : > { %v2255_v51 = vpop.eup %2254 }
 0x1cd   : > { %v1198_v22 = vmul.f32 %v2255_v51, %v2986_v53  ;;  %1475 = vmatmul.mubr.f32.gmra.mrb[50].mxu1 %v1195_v57  ;;  %v2257_v56 = vpop.eup %2256  ;;  %v1215_v57 = vld [vmem:[#allocation2 + $0x70] sm:$0xff] }
 0x1ce   : > { %v1199_v38 = vmul.f32 %v2257_v56, %v2992_v45 }
 0x1cf   : > { %1479 = vmatprep.mubr.f32.mxu1 %v1198_v22  ;;  %v2259_v54 = vpop.eup %2258 }
 0x1d0   : > { %v1200_v9 = vmul.f32 %v2259_v54, %v2996_v10  ;;  %v1204_v10 = vld [vmem:[#allocation2 + $0x18] sm:$0xff] }
 0x1d1   : > { %1480 = vmatmul.mubr.f32.gmra.mrb[52].mxu1 %v1197_v63  ;;  %v1216_v63 = vld [vmem:[#allocation2 + $0x78] sm:$0xff] }
 0x1d2   : > { %1484 = vmatprep.mubr.f32.mxu1 %v1200_v9 }
 0x1d5   : > { %1485 = vmatmul.mubr.f32.gmra.mrb[54].mxu1 %v1199_v38 }
 0x229   : > { %v1331_v55 = vpop.f32.mrb[64].mxu0 }
 0x22a   : > { %v1490_v27 = vadd.f32 %v1331_v55, %v1201_v14  ;;  %v1333_v30 = vpop.f32.mrb[65].mxu0  ;;  %v1217_v14 = vld [vmem:[#allocation2 + $0x80] sm:$0xff] }
 0x22c   : > { %1522 = vst [vmem:[#allocation2] sm:$0xff] %v1490_v27 }
 0x22d   : > { %v1336_v53 = vpop.f32.mrb[66].mxu0 }
 0x22e   : > { %v1491_v40 = vadd.f32 %v1336_v53, %v1202_v59  ;;  %v1338_v29 = vpop.f32.mrb[67].mxu0  ;;  %v1218_v59 = vld [vmem:[#allocation2 + $0x88] sm:$0xff] }
 0x230   : > { %1523 = vst [vmem:[#allocation2 + $0x8] sm:$0xff] %v1491_v40 }
 0x231   : > { %v1341_v47 = vpop.f32.mrb[68].mxu0 }
 0x232   : > { %v1492_v61 = vadd.f32 %v1341_v47, %v1203_v1  ;;  %v1343_v4 = vpop.f32.mrb[69].mxu0  ;;  %v1219_v1 = vld [vmem:[#allocation2 + $0x90] sm:$0xff] }
 0x234   : > { %1524 = vst [vmem:[#allocation2 + $0x10] sm:$0xff] %v1492_v61 }
 0x237   : > { %v1346_v5 = vpop.f32.mrb[70].mxu0 }
 0x238   : > { %v1493_v45 = vadd.f32 %v1346_v5, %v1204_v10  ;;  %v1348_v2 = vpop.f32.mrb[71].mxu0  ;;  %v1220_v10 = vld [vmem:[#allocation2 + $0x98] sm:$0xff] }
 0x23a   : > { %1525 = vst [vmem:[#allocation2 + $0x18] sm:$0xff] %v1493_v45 }
 0x23b   : > { %v1351_v6 = vpop.f32.mrb[0].mxu1 }
 0x23c   : > { %v1494_v7 = vadd.f32 %v1351_v6, %v1205_v46  ;;  %v1353_v42 = vpop.f32.mrb[1].mxu1  ;;  %v1221_v46 = vld [vmem:[#allocation2 + $0xa0] sm:$0xff] }
 0x23e   : > { %1526 = vst [vmem:[#allocation2 + $0x20] sm:$0xff] %v1494_v7 }
 0x23f   : > { %v1356_v8 = vpop.f32.mrb[2].mxu1 }
 0x240   : > { %v1495_v48 = vadd.f32 %v1356_v8, %v1206_v58  ;;  %v1358_v43 = vpop.f32.mrb[3].mxu1  ;;  %v1222_v58 = vld [vmem:[#allocation2 + $0xa8] sm:$0xff] }
 0x242   : > { %1527 = vst [vmem:[#allocation2 + $0x28] sm:$0xff] %v1495_v48 }
 0x243   : > { %v1361_v11 = vpop.f32.mrb[4].mxu1 }
 0x244   : > { %v1496_v50 = vadd.f32 %v1361_v11, %v1207_v13  ;;  %v1363_v20 = vpop.f32.mrb[5].mxu1  ;;  %v1223_v13 = vld [vmem:[#allocation2 + $0xb0] sm:$0xff] }
 0x246   : > { %1528 = vst [vmem:[#allocation2 + $0x30] sm:$0xff] %v1496_v50 }
 0x247   : > { %v1366_v60 = vpop.f32.mrb[6].mxu1 }
 0x248   : > { %v1497_v21 = vadd.f32 %v1366_v60, %v1208_v17  ;;  %v1368_v3 = vpop.f32.mrb[7].mxu1  ;;  %v1224_v17 = vld [vmem:[#allocation2 + $0xb8] sm:$0xff] }
 0x24a   : > { %1529 = vst [vmem:[#allocation2 + $0x38] sm:$0xff] %v1497_v21 }
 0x24b   : > { %v1371_v25 = vpop.f32.mrb[8].mxu1 }
 0x24c   : > { %v1498_v26 = vadd.f32 %v1371_v25, %v1209_v24  ;;  %v1373_v0 = vpop.f32.mrb[9].mxu1  ;;  %v1225_v24 = vld [vmem:[#allocation2 + $0xc0] sm:$0xff] }
 0x24e   : > { %1530 = vst [vmem:[#allocation2 + $0x40] sm:$0xff] %v1498_v26 }
 0x250   : > { %v1376_v31 = vpop.f32.mrb[10].mxu1 }
 0x251   : > { %v1499_v18 = vadd.f32 %v1376_v31, %v1210_v39  ;;  %v1378_v16 = vpop.f32.mrb[11].mxu1  ;;  %v1226_v39 = vld [vmem:[#allocation2 + $0xc8] sm:$0xff] }
 0x253   : > { %1531 = vst [vmem:[#allocation2 + $0x48] sm:$0xff] %v1499_v18 }
 0x254   : > { %v1381_v32 = vpop.f32.mrb[12].mxu1 }
 0x255   : > { %v1500_v28 = vadd.f32 %v1381_v32, %v1211_v52  ;;  %v1383_v23 = vpop.f32.mrb[13].mxu1  ;;  %v1227_v52 = vld [vmem:[#allocation2 + $0xd0] sm:$0xff] }
 0x257   : > { %1532 = vst [vmem:[#allocation2 + $0x50] sm:$0xff] %v1500_v28 }
 0x258   : > { %v1386_v35 = vpop.f32.mrb[14].mxu1 }
 0x259   : > { %v1501_v15 = vadd.f32 %v1386_v35, %v1212_v12  ;;  %v1388_v37 = vpop.f32.mrb[15].mxu1  ;;  %v1228_v12 = vld [vmem:[#allocation2 + $0xd8] sm:$0xff] }
 0x25b   : > { %1533 = vst [vmem:[#allocation2 + $0x58] sm:$0xff] %v1501_v15 }
 0x25c   : > { %v1391_v49 = vpop.f32.mrb[16].mxu1 }
 0x25d   : > { %v1502_v36 = vadd.f32 %v1391_v49, %v1213_v41  ;;  %v1393_v44 = vpop.f32.mrb[17].mxu1  ;;  %v1229_v41 = vld [vmem:[#allocation2 + $0xe0] sm:$0xff] }
 0x25f   : > { %1534 = vst [vmem:[#allocation2 + $0x60] sm:$0xff] %v1502_v36 }
 0x260   : > { %v1396_v34 = vpop.f32.mrb[18].mxu1 }
 0x261   : > { %v1503_v62 = vadd.f32 %v1396_v34, %v1214_v19  ;;  %v1398_v33 = vpop.f32.mrb[19].mxu1  ;;  %v1230_v19 = vld [vmem:[#allocation2 + $0xe8] sm:$0xff] }
 0x263   : > { %1535 = vst [vmem:[#allocation2 + $0x68] sm:$0xff] %v1503_v62 }
 0x264   : > { %v1401_v51 = vpop.f32.mrb[20].mxu1 }
 0x265   : > { %v1504_v22 = vadd.f32 %v1401_v51, %v1215_v57  ;;  %v1403_v56 = vpop.f32.mrb[21].mxu1  ;;  %v1231_v57 = vld [vmem:[#allocation2 + $0xf0] sm:$0xff] }
 0x267   : > { %1536 = vst [vmem:[#allocation2 + $0x70] sm:$0xff] %v1504_v22 }
 0x268   : > { %v1406_v54 = vpop.f32.mrb[22].mxu1 }
 0x269   : > { %v1505_v9 = vadd.f32 %v1406_v54, %v1216_v63  ;;  %v1408_v38 = vpop.f32.mrb[23].mxu1  ;;  %v1232_v63 = vld [vmem:[#allocation2 + $0xf8] sm:$0xff] }
 0x26b   : > { %1537 = vst [vmem:[#allocation2 + $0x78] sm:$0xff] %v1505_v9 }
 0x26c   : > { %v1411_v55 = vpop.f32.mrb[24].mxu1 }
 0x26d   : > { %v1506_v27 = vadd.f32 %v1411_v55, %v1217_v14  ;;  %v1413_v30 = vpop.f32.mrb[25].mxu1  ;;  %v1558_v14 = vld [vmem:[#allocation2] sm:$0xff] (!%p1842_p12) }
 0x26e   : > { %v3020_v55 = vld [vmem:[%s3169_s4] ss:$0 sm:$0xff] (!%p1842_p12) }
 0x26f   : > { %1538 = vst [vmem:[#allocation2 + $0x80] sm:$0xff] %v1506_v27  ;;  %v1559_v27 = vld [vmem:[#allocation2 + $0x8] sm:$0xff] (!%p1842_p12)  ;;  %v1597_v30 = vadd.f32 (!%p1842_p12), %v3020_v55, %v1558_v14 }
 0x270   : > { %v1416_v53 = vpop.f32.mrb[26].mxu1 }
 0x271   : > { %v1507_v40 = vadd.f32 %v1416_v53, %v1218_v59  ;;  %v1418_v29 = vpop.f32.mrb[27].mxu1  ;;  %v1598_v59 = vadd.f32 (!%p1842_p12), %v3020_v55, %v1559_v27  ;;  %v1560_v53 = vld [vmem:[#allocation2 + $0x10] sm:$0xff] (!%p1842_p12)  ;;  %1629 = vst [vmem:[%s3170_s5] sm:$0xff] (!%p1842_p12), %v1597_v30 }
 0x272   : > { %v1562_v29 = vld [vmem:[#allocation2 + $0x20] sm:$0xff] (!%p1842_p12) }
 0x273   : > { %1539 = vst [vmem:[#allocation2 + $0x88] sm:$0xff] %v1507_v40  ;;  %v1561_v40 = vld [vmem:[#allocation2 + $0x18] sm:$0xff] (!%p1842_p12)  ;;  %1630 = vst [vmem:[%s3170_s5 + $0x8] sm:$0xff] (!%p1842_p12), %v1598_v59 }
 0x274   : > { %v1421_v47 = vpop.f32.mrb[28].mxu1 }
 0x275   : > { %v1508_v61 = vadd.f32 %v1421_v47, %v1219_v1  ;;  %v1423_v4 = vpop.f32.mrb[29].mxu1  ;;  %v1599_v1 = vadd.f32 (!%p1842_p12), %v3020_v55, %v1560_v53  ;;  %v1600_v47 = vadd.f32 (!%p1842_p12), %v3020_v55, %v1561_v40 }
 0x276   : > { %v1563_v4 = vld [vmem:[#allocation2 + $0x28] sm:$0xff] (!%p1842_p12) }
 0x277   : > { %1540 = vst [vmem:[#allocation2 + $0x90] sm:$0xff] %v1508_v61  ;;  %v1601_v61 = vadd.f32 (!%p1842_p12), %v3020_v55, %v1562_v29  ;;  %1631 = vst [vmem:[%s3170_s5 + $0x10] sm:$0xff] (!%p1842_p12), %v1599_v1 }
 0x278   : > { %v1426_v5 = vpop.f32.mrb[30].mxu1  ;;  %1632 = vst [vmem:[%s3170_s5 + $0x18] sm:$0xff] (!%p1842_p12), %v1600_v47 }
 0x279   : > { %v1509_v45 = vadd.f32 %v1426_v5, %v1220_v10  ;;  %v1428_v2 = vpop.f32.mrb[31].mxu1  ;;  %v1564_v10 = vld [vmem:[#allocation2 + $0x30] sm:$0xff] (!%p1842_p12)  ;;  %v1565_v5 = vld [vmem:[#allocation2 + $0x38] sm:$0xff] (!%p1842_p12)  ;;  %1633 = vst [vmem:[%s3170_s5 + $0x20] sm:$0xff] (!%p1842_p12), %v1601_v61 }
 0x27a   : > { %v1603_v2 = vadd.f32 (!%p1842_p12), %v3020_v55, %v1564_v10 }
 0x27b   : > { %1541 = vst [vmem:[#allocation2 + $0x98] sm:$0xff] %v1509_v45  ;;  %v1602_v45 = vadd.f32 (!%p1842_p12), %v3020_v55, %v1563_v4 }
 0x27c   : > { %v1431_v6 = vpop.f32.mrb[32].mxu1  ;;  %1635 = vst [vmem:[%s3170_s5 + $0x30] sm:$0xff] (!%p1842_p12), %v1603_v2 }
 0x27d   : > { %v1510_v7 = vadd.f32 %v1431_v6, %v1221_v46  ;;  %v1433_v42 = vpop.f32.mrb[33].mxu1  ;;  %v1604_v46 = vadd.f32 (!%p1842_p12), %v3020_v55, %v1565_v5  ;;  %v1566_v6 = vld [vmem:[#allocation2 + $0x40] sm:$0xff] (!%p1842_p12)  ;;  %1634 = vst [vmem:[%s3170_s5 + $0x28] sm:$0xff] (!%p1842_p12), %v1602_v45 }
 0x27e   : > { %v1568_v42 = vld [vmem:[#allocation2 + $0x50] sm:$0xff] (!%p1842_p12) }
 0x27f   : > { %1542 = vst [vmem:[#allocation2 + $0xa0] sm:$0xff] %v1510_v7  ;;  %v1567_v7 = vld [vmem:[#allocation2 + $0x48] sm:$0xff] (!%p1842_p12)  ;;  %1636 = vst [vmem:[%s3170_s5 + $0x38] sm:$0xff] (!%p1842_p12), %v1604_v46 }
 0x280   : > { %v1436_v8 = vpop.f32.mrb[34].mxu1 }
 0x281   : > { %v1511_v48 = vadd.f32 %v1436_v8, %v1222_v58  ;;  %v1438_v43 = vpop.f32.mrb[35].mxu1  ;;  %v1605_v58 = vadd.f32 (!%p1842_p12), %v3020_v55, %v1566_v6  ;;  %v1606_v8 = vadd.f32 (!%p1842_p12), %v3020_v55, %v1567_v7 }
 0x282   : > { %v1569_v43 = vld [vmem:[#allocation2 + $0x58] sm:$0xff] (!%p1842_p12) }
 0x283   : > { %1543 = vst [vmem:[#allocation2 + $0xa8] sm:$0xff] %v1511_v48  ;;  %v1607_v48 = vadd.f32 (!%p1842_p12), %v3020_v55, %v1568_v42  ;;  %1637 = vst [vmem:[%s3170_s5 + $0x40] sm:$0xff] (!%p1842_p12), %v1605_v58 }
 0x284   : > { %v1441_v11 = vpop.f32.mrb[36].mxu1  ;;  %1638 = vst [vmem:[%s3170_s5 + $0x48] sm:$0xff] (!%p1842_p12), %v1606_v8 }
 0x285   : > { %v1512_v50 = vadd.f32 %v1441_v11, %v1223_v13  ;;  %v1443_v20 = vpop.f32.mrb[37].mxu1  ;;  %v1570_v13 = vld [vmem:[#allocation2 + $0x60] sm:$0xff] (!%p1842_p12)  ;;  %v1571_v11 = vld [vmem:[#allocation2 + $0x68] sm:$0xff] (!%p1842_p12)  ;;  %1639 = vst [vmem:[%s3170_s5 + $0x50] sm:$0xff] (!%p1842_p12), %v1607_v48 }
 0x286   : > { %v1609_v20 = vadd.f32 (!%p1842_p12), %v3020_v55, %v1570_v13 }
 0x287   : > { %1544 = vst [vmem:[#allocation2 + $0xb0] sm:$0xff] %v1512_v50  ;;  %v1608_v50 = vadd.f32 (!%p1842_p12), %v3020_v55, %v1569_v43 }
 0x288   : > { %v1446_v60 = vpop.f32.mrb[38].mxu1  ;;  %1641 = vst [vmem:[%s3170_s5 + $0x60] sm:$0xff] (!%p1842_p12), %v1609_v20 }
 0x289   : > { %v1513_v21 = vadd.f32 %v1446_v60, %v1224_v17  ;;  %v1448_v3 = vpop.f32.mrb[39].mxu1  ;;  %v1610_v17 = vadd.f32 (!%p1842_p12), %v3020_v55, %v1571_v11  ;;  %v1572_v60 = vld [vmem:[#allocation2 + $0x70] sm:$0xff] (!%p1842_p12)  ;;  %1640 = vst [vmem:[%s3170_s5 + $0x58] sm:$0xff] (!%p1842_p12), %v1608_v50 }
 0x28a   : > { %v1574_v3 = vld [vmem:[#allocation2 + $0x80] sm:$0xff] (!%p1842_p12) }
 0x28b   : > { %1545 = vst [vmem:[#allocation2 + $0xb8] sm:$0xff] %v1513_v21  ;;  %v1573_v21 = vld [vmem:[#allocation2 + $0x78] sm:$0xff] (!%p1842_p12)  ;;  %1642 = vst [vmem:[%s3170_s5 + $0x68] sm:$0xff] (!%p1842_p12), %v1610_v17 }
 0x28c   : > { %v1451_v25 = vpop.f32.mrb[40].mxu1 }
 0x28d   : > { %v1514_v26 = vadd.f32 %v1451_v25, %v1225_v24  ;;  %v1453_v0 = vpop.f32.mrb[41].mxu1  ;;  %v1611_v24 = vadd.f32 (!%p1842_p12), %v3020_v55, %v1572_v60  ;;  %v1612_v25 = vadd.f32 (!%p1842_p12), %v3020_v55, %v1573_v21 }
 0x28e   : > { %v1575_v0 = vld [vmem:[#allocation2 + $0x88] sm:$0xff] (!%p1842_p12) }
 0x28f   : > { %1546 = vst [vmem:[#allocation2 + $0xc0] sm:$0xff] %v1514_v26  ;;  %v1613_v26 = vadd.f32 (!%p1842_p12), %v3020_v55, %v1574_v3  ;;  %1643 = vst [vmem:[%s3170_s5 + $0x70] sm:$0xff] (!%p1842_p12), %v1611_v24 }
 0x290   : > { %v1456_v31 = vpop.f32.mrb[42].mxu1  ;;  %1644 = vst [vmem:[%s3170_s5 + $0x78] sm:$0xff] (!%p1842_p12), %v1612_v25 }
 0x291   : > { %v1515_v18 = vadd.f32 %v1456_v31, %v1226_v39  ;;  %v1458_v16 = vpop.f32.mrb[43].mxu1  ;;  %v1576_v39 = vld [vmem:[#allocation2 + $0x90] sm:$0xff] (!%p1842_p12)  ;;  %v1577_v31 = vld [vmem:[#allocation2 + $0x98] sm:$0xff] (!%p1842_p12)  ;;  %1645 = vst [vmem:[%s3170_s5 + $0x80] sm:$0xff] (!%p1842_p12), %v1613_v26 }
 0x292   : > { %v1615_v16 = vadd.f32 (!%p1842_p12), %v3020_v55, %v1576_v39 }
 0x293   : > { %1547 = vst [vmem:[#allocation2 + $0xc8] sm:$0xff] %v1515_v18  ;;  %v1614_v18 = vadd.f32 (!%p1842_p12), %v3020_v55, %v1575_v0 }
 0x294   : > { %v1461_v32 = vpop.f32.mrb[44].mxu1  ;;  %1647 = vst [vmem:[%s3170_s5 + $0x90] sm:$0xff] (!%p1842_p12), %v1615_v16 }
 0x295   : > { %v1516_v28 = vadd.f32 %v1461_v32, %v1227_v52  ;;  %v1463_v23 = vpop.f32.mrb[45].mxu1  ;;  %v1616_v52 = vadd.f32 (!%p1842_p12), %v3020_v55, %v1577_v31  ;;  %v1578_v32 = vld [vmem:[#allocation2 + $0xa0] sm:$0xff] (!%p1842_p12)  ;;  %1646 = vst [vmem:[%s3170_s5 + $0x88] sm:$0xff] (!%p1842_p12), %v1614_v18 }
 0x296   : > { %v1580_v23 = vld [vmem:[#allocation2 + $0xb0] sm:$0xff] (!%p1842_p12) }
 0x297   : > { %1548 = vst [vmem:[#allocation2 + $0xd0] sm:$0xff] %v1516_v28  ;;  %v1579_v28 = vld [vmem:[#allocation2 + $0xa8] sm:$0xff] (!%p1842_p12)  ;;  %1648 = vst [vmem:[%s3170_s5 + $0x98] sm:$0xff] (!%p1842_p12), %v1616_v52 }
 0x298   : > { %v1466_v35 = vpop.f32.mrb[46].mxu1 }
 0x299   : > { %v1517_v15 = vadd.f32 %v1466_v35, %v1228_v12  ;;  %v1468_v37 = vpop.f32.mrb[47].mxu1  ;;  %v1617_v12 = vadd.f32 (!%p1842_p12), %v3020_v55, %v1578_v32  ;;  %v1618_v35 = vadd.f32 (!%p1842_p12), %v3020_v55, %v1579_v28 }
 0x29a   : > { %v1581_v37 = vld [vmem:[#allocation2 + $0xb8] sm:$0xff] (!%p1842_p12) }
 0x29b   : > { %1549 = vst [vmem:[#allocation2 + $0xd8] sm:$0xff] %v1517_v15  ;;  %v1619_v15 = vadd.f32 (!%p1842_p12), %v3020_v55, %v1580_v23  ;;  %1649 = vst [vmem:[%s3170_s5 + $0xa0] sm:$0xff] (!%p1842_p12), %v1617_v12 }
 0x29c   : > { %v1471_v49 = vpop.f32.mrb[48].mxu1  ;;  %1650 = vst [vmem:[%s3170_s5 + $0xa8] sm:$0xff] (!%p1842_p12), %v1618_v35 }
 0x29d   : > { %v1518_v36 = vadd.f32 %v1471_v49, %v1229_v41  ;;  %v1473_v44 = vpop.f32.mrb[49].mxu1  ;;  %v1582_v41 = vld [vmem:[#allocation2 + $0xc0] sm:$0xff] (!%p1842_p12)  ;;  %v1583_v49 = vld [vmem:[#allocation2 + $0xc8] sm:$0xff] (!%p1842_p12)  ;;  %1651 = vst [vmem:[%s3170_s5 + $0xb0] sm:$0xff] (!%p1842_p12), %v1619_v15 }
 0x29e   : > { %v1621_v44 = vadd.f32 (!%p1842_p12), %v3020_v55, %v1582_v41 }
 0x29f   : > { %1550 = vst [vmem:[#allocation2 + $0xe0] sm:$0xff] %v1518_v36  ;;  %v1620_v36 = vadd.f32 (!%p1842_p12), %v3020_v55, %v1581_v37 }
 0x2a0   : > { %v1476_v34 = vpop.f32.mrb[50].mxu1  ;;  %1653 = vst [vmem:[%s3170_s5 + $0xc0] sm:$0xff] (!%p1842_p12), %v1621_v44 }
 0x2a1   : > { %v1519_v62 = vadd.f32 %v1476_v34, %v1230_v19  ;;  %v1478_v33 = vpop.f32.mrb[51].mxu1  ;;  %v1622_v19 = vadd.f32 (!%p1842_p12), %v3020_v55, %v1583_v49  ;;  %v1584_v34 = vld [vmem:[#allocation2 + $0xd0] sm:$0xff] (!%p1842_p12)  ;;  %1652 = vst [vmem:[%s3170_s5 + $0xb8] sm:$0xff] (!%p1842_p12), %v1620_v36 }
 0x2a3   : > { %1551 = vst [vmem:[#allocation2 + $0xe8] sm:$0xff] %v1519_v62  ;;  %v1585_v62 = vld [vmem:[#allocation2 + $0xd8] sm:$0xff] (!%p1842_p12)  ;;  %1654 = vst [vmem:[%s3170_s5 + $0xc8] sm:$0xff] (!%p1842_p12), %v1622_v19 }
 0x2a4   : > { %v1481_v51 = vpop.f32.mrb[52].mxu1 }
 0x2a5   : > { %v1520_v22 = vadd.f32 %v1481_v51, %v1231_v57  ;;  %v1483_v56 = vpop.f32.mrb[53].mxu1  ;;  %1557 = sbr.rel (%p1842_p12) target bundleno = 694 (0x2b6), region = 71  ;;  %v1623_v57 = vadd.f32 (!%p1842_p12), %v3020_v55, %v1584_v34  ;;  %v1624_v51 = vadd.f32 (!%p1842_p12), %v3020_v55, %v1585_v62 }
 0x2a6   : > { %v1586_v33 = vld [vmem:[#allocation2 + $0xe0] sm:$0xff] (!%p1842_p12) }
 0x2a7   : > { %1552 = vst [vmem:[#allocation2 + $0xf0] sm:$0xff] %v1520_v22  ;;  %v1625_v22 = vadd.f32 (!%p1842_p12), %v3020_v55, %v1586_v33  ;;  %1655 = vst [vmem:[%s3170_s5 + $0xd0] sm:$0xff] (!%p1842_p12), %v1623_v57 }
 0x2a8   : > { %v1486_v54 = vpop.f32.mrb[54].mxu1  ;;  %1656 = vst [vmem:[%s3170_s5 + $0xd8] sm:$0xff] (!%p1842_p12), %v1624_v51 }
 0x2a9   : > { %v1521_v9 = vadd.f32 %v1486_v54, %v1232_v63  ;;  %v1488_v38 = vpop.f32.mrb[55].mxu1  ;;  %1657 = vst [vmem:[%s3170_s5 + $0xe0] sm:$0xff] (!%p1842_p12), %v1625_v22 }
 0x2aa   : > { %v1587_v56 = vld [vmem:[#allocation2 + $0xe8] sm:$0xff] (!%p1842_p12) }
 0x2ab   : > { %1553 = vst [vmem:[#allocation2 + $0xf8] sm:$0xff] %v1521_v9  ;;  %v1626_v9 = vadd.f32 (!%p1842_p12), %v3020_v55, %v1587_v56 }
 0x2ad   : > { %1658 = vst [vmem:[%s3170_s5 + $0xe8] sm:$0xff] %v1626_v9 }
 0x2ae   : > { %v1588_v63 = vld [vmem:[#allocation2 + $0xf0] sm:$0xff] }
 0x2af   : > { %v1627_v38 = vadd.f32 %v3020_v55, %v1588_v63 }
 0x2b1   : > { %1659 = vst [vmem:[%s3170_s5 + $0xf0] sm:$0xff] %v1627_v38 }
 0x2b2   : > { %v1589_v54 = vld [vmem:[#allocation2 + $0xf8] sm:$0xff] }
 0x2b3   : > { %v1628_v14 = vadd.f32 %v3020_v55, %v1589_v54 }
 0x2b5   : > { %1660 = vst [vmem:[%s3170_s5 + $0xf8] sm:$0xff] %v1628_v14 }
 0x2b6 PF: > { %s15_s22 = sadd.s32 1, %s2298_s22   ;;  %s3171_s18 = smov %s2286_s19 }
 0x2b7   : > { %p12_p13 = scmp.ge.s32.totalorder %s15_s22, 4   ;;  %s3172_s19 = smov %s2368_s26 }
 0x2b8   : > { %s3173_s20 = smov %s2294_s21  ;;  %s3174_s21 = smov %s3176_s23 }
 0x2b9   :  { %14 = sbr.rel (!%p12_p13) target bundleno = 3 (0x3), region = 115 }

</bundles_post_ra>
